<compile_context>
chip_gen: v7x
topology: tpu7x:2x2x1
jax: 0.10.0
libtpu: 0.0.40
codegen_flags: <defaults>
</compile_context>

<pallas_src>
import functools
import math

import jax
import jax.numpy as jnp
from jax import lax
from jax.experimental import pallas as pl
from jax.experimental.pallas import tpu as pltpu


MM_DTYPE = jnp.bfloat16          # MXU input dtype (set jnp.float32 for exact)
_BN_EPS = 1e-5


def _hw_config():
    """(vmem_limit_bytes, row_tile) tuned per TPU generation."""
    try:
        cap = int(pltpu.get_tpu_info().vmem_capacity_bytes)
    except Exception:
        cap = 64 * 1024 * 1024                       # conservative (v7x-sized)
    if cap >= 100 * 1024 * 1024:                     # v5e / v6e: 128 MiB VMEM
        return 96 * 1024 * 1024, 256
    return 40 * 1024 * 1024, 128                     # v7x: 64 MiB VMEM


_VMEM_LIMIT, _ROW_TILE = _hw_config()


def _pick_tile(n, row_tile=_ROW_TILE):
    if n <= row_tile or n % row_tile != 0:
        return n
    return row_tile


# ----------------------------------------------------------------------------
# Pallas kernels
# ----------------------------------------------------------------------------
def edge_conv_kernel(x_ref, bf_ref, sqf_ref, wa_ref, c1_ref, wg_ref, cg_ref,
                     o_ref, d_sc, s_sc, *, k, ti):
    """Attentional DynamicEdgeConv for one (batch, row-tile) grid point.

    x_ref  : (1, N, Cin)   full layer input of this batch element
    bf_ref : (1, N, Cout)  precomputed x @ W_b (bf16, hoisted out of the grid)
    sqf_ref: (1, 1, N)     precomputed ||x_j||^2 (row vector)
    wa_ref : (Cin, Cout)   folded weight multiplying x_i   (W_top - W_bot)
    c1_ref : (1, Cout)     folded edge-MLP bias
    wg_ref : (Cout, 1)     folded gate weight (column vector -> MXU matvec)
    cg_ref : (1, 1)        folded gate bias
    o_ref  : (1, TI, Cout) output node features for this row tile
    d_sc   : (TI, N)  f32  distance slab, masked in place (bounded live range)
    s_sc   : (k*TI, N) bf16 stacked one-hot selection matrix
    """
    n = x_ref.shape[1]
    cout = o_ref.shape[-1]

    x2d = x_ref.at[0]                                    # (N, Cin) ref view
    xf = x2d[...].astype(jnp.float32)                    # (N, Cin)
    row0 = pl.multiple_of(pl.program_id(1) * ti, ti)
    xi = x2d[pl.ds(row0, ti), :].astype(jnp.float32)     # (TI, Cin)

    # pairwise squared distances; the per-row constant ||x_i||^2 is dropped
    # (it does not affect the per-row argmin).
    gram = lax.dot_general(xi, xf, (((1,), (1,)), ((), ())),
                           preferred_element_type=jnp.float32)   # (TI, N)
    d_sc[...] = sqf_ref[0] - 2.0 * gram                  # (1,N) bcast - (TI,N)

    # ---- phase 1: pure selection. k iterative argmins (ties -> lowest column
    # index) build a stacked one-hot matrix; distance slab masked in place.
    col = lax.broadcasted_iota(jnp.int32, (ti, n), 1)
    for s in range(k):
        d = d_sc[...]
        row_min = jnp.min(d, axis=-1, keepdims=True)
        is_min = d <= row_min
        first = jnp.min(jnp.where(is_min, col, n), axis=-1, keepdims=True)
        sel = col == first                               # (TI, N), one-hot rows
        d_sc[...] = jnp.where(sel, jnp.inf, d)
        s_sc[pl.ds(s * ti, ti), :] = jnp.where(sel, 1.0, 0.0).astype(MM_DTYPE)

    # ---- phase 2: one batched gather matmul + one gate matvec + softmax(k).
    a_full = (jnp.dot(xi, wa_ref[...], preferred_element_type=jnp.float32)
              + c1_ref[...])                             # (TI, Cout)
    b_sel = jnp.dot(s_sc[...], bf_ref[0],
                    preferred_element_type=jnp.float32)  # (k*TI, Cout)

    e_pre = b_sel.reshape(k, ti, cout) + a_full[None]    # (k, TI, Cout)
    e = e_pre * jax.nn.sigmoid(e_pre)                    # SiLU (EUP)

    wg = wg_ref[...].astype(jnp.float32)
    g_pre = (jnp.dot(e.reshape(k * ti, cout), wg,
                     preferred_element_type=jnp.float32).reshape(k, ti, 1)
             + cg_ref[...])
    g = g_pre * jax.nn.sigmoid(g_pre)                    # (k, TI, 1)

    # softmax over the k selected neighbours (leading axis -> cheap reduces)
    m = jnp.max(g, axis=0, keepdims=True)
    p = jnp.exp(g - m)                                   # (k, TI, 1)
    denom = jnp.sum(p, axis=0)                           # (TI, 1)
    y = jnp.sum(p * e, axis=0) / denom                   # (TI, Cout)
    o_ref[0] = y.astype(o_ref.dtype)


def head_kernel(x_ref, ws_ref, cs_ref, wg_ref, cg_ref, wo_ref, co_ref,
                o_ref, m_sc, l_sc, acc_sc):
    """Shared MLP (single K=256 matmul) + streaming attentional aggregation
    + output MLP.  Grid is (batch, node-tile).

    NOTE: the scratch accumulators are reset at t==0 and finalized at
    t==nt-1; this relies on the node-tile axis being iterated fully and
    sequentially within each batch element, which holds with grid=(B, nt)
    and dimension_semantics=("parallel", "arbitrary").  Do not make the
    node-tile axis parallel.
    """
    t = pl.program_id(1)
    nt = pl.num_programs(1)

    @pl.when(t == 0)
    def _():
        m_sc[...] = jnp.full_like(m_sc, -jnp.inf)
        l_sc[...] = jnp.zeros_like(l_sc)
        acc_sc[...] = jnp.zeros_like(acc_sc)

    # shared MLP on this node tile (bf16 MXU inputs, f32 accumulation)
    h_pre = jnp.dot(x_ref[0].astype(MM_DTYPE), ws_ref[...],
                    preferred_element_type=jnp.float32) + cs_ref[...]
    h = h_pre * jax.nn.sigmoid(h_pre)                    # (TI, 512)

    g_pre = jnp.dot(h.astype(MM_DTYPE), wg_ref[...],
                    preferred_element_type=jnp.float32) + cg_ref[...]
    g = g_pre * jax.nn.sigmoid(g_pre)                    # (TI, 512)

    # streaming per-channel softmax over the nodes of this graph
    t_max = jnp.max(g, axis=0, keepdims=True)            # (1, 512)
    m_new = jnp.maximum(m_sc[...], t_max)
    scale = jnp.exp(m_sc[...] - m_new)
    p = jnp.exp(g - m_new)                               # (TI, 512)
    l_sc[...] = scale * l_sc[...] + jnp.sum(p, axis=0, keepdims=True)
    acc_sc[...] = scale * acc_sc[...] + jnp.sum(p * h, axis=0, keepdims=True)
    m_sc[...] = m_new

    @pl.when(t == nt - 1)
    def _():
        agg = acc_sc[...] / l_sc[...]                    # (1, 512)
        o_pre = jnp.dot(agg, wo_ref[...],
                        preferred_element_type=jnp.float32) + co_ref[...]
        o_ref[0] = (o_pre * jax.nn.sigmoid(o_pre)).astype(o_ref.dtype)


# ----------------------------------------------------------------------------
# Wrappers (pallas_call plumbing)
# ----------------------------------------------------------------------------
def attn_edge_conv(x, p, k):
    bsz, n, cin = x.shape
    cout = p["wa"].shape[1]
    assert n >= k, f"need N >= k (got N={n}, k={k})"
    ti = _pick_tile(n)
    nt = n // ti

    # hoisted once-per-layer projections (were recomputed per row tile before)
    bf = (x @ p["wb"]).astype(MM_DTYPE)                  # (B, N, Cout) bf16
    sqf = jnp.sum(x * x, axis=-1)[:, None, :]            # (B, 1, N) f32

    kern = functools.partial(edge_conv_kernel, k=k, ti=ti)

    flops = int(2 * bsz * n * n * cin                    # gram
                + 2 * bsz * k * n * n * cout             # stacked one-hot gather
                + 2 * bsz * n * cin * cout               # a-projection
                + 2 * bsz * k * n * cout)                # gate matvec
    transc = int(3 * bsz * k * n * (cout + 1))
    bytes_acc = int(bsz * nt * n * (cin * 4 + cout * 2 + 4) + bsz * n * cout * 4)

    def full(shape):
        return pl.BlockSpec(shape, lambda b, t: (0,) * len(shape))

    return pl.pallas_call(
        kern,
        out_shape=jax.ShapeDtypeStruct((bsz, n, cout), jnp.float32),
        grid=(bsz, nt),
        in_specs=[
            pl.BlockSpec((1, n, cin), lambda b, t: (b, 0, 0)),    # x (full N)
            pl.BlockSpec((1, n, cout), lambda b, t: (b, 0, 0)),   # x @ W_b
            pl.BlockSpec((1, 1, n), lambda b, t: (b, 0, 0)),      # ||x_j||^2
            full(p["wa"].shape), full(p["c1"].shape),
            full(p["wg"].shape), full(p["cg"].shape),
        ],
        out_specs=pl.BlockSpec((1, ti, cout), lambda b, t: (b, t, 0)),
        scratch_shapes=[pltpu.VMEM((ti, n), jnp.float32),         # distance slab
                        pltpu.VMEM((k * ti, n), MM_DTYPE)],       # one-hot stack
        compiler_params=pltpu.CompilerParams(
            dimension_semantics=("parallel", "parallel"),
            vmem_limit_bytes=_VMEM_LIMIT),
        cost_estimate=pl.CostEstimate(flops=flops, transcendentals=transc,
                                      bytes_accessed=bytes_acc),
    )(x, bf, sqf, p["wa"], p["c1"], p["wg"], p["cg"])


def head(xcat, p):
    bsz, n, cfeat = xcat.shape
    hidden = p["cs"].shape[-1]
    zdim = p["wo"].shape[1]
    ti = _pick_tile(n)
    nt = n // ti

    flops = int(2 * bsz * n * cfeat * hidden + 2 * bsz * n * hidden * hidden
                + 2 * bsz * hidden * zdim)
    transc = int(3 * bsz * n * hidden)
    bytes_acc = int(bsz * n * cfeat * 4 + bsz * zdim * 4
                    + (cfeat + hidden) * hidden * 2 + hidden * zdim * 4)

    def full(shape):
        return pl.BlockSpec(shape, lambda b, t: (0,) * len(shape))

    out = pl.pallas_call(
        head_kernel,
        out_shape=jax.ShapeDtypeStruct((bsz, 1, zdim), jnp.float32),
        grid=(bsz, nt),
        in_specs=[
            pl.BlockSpec((1, ti, cfeat), lambda b, t: (b, t, 0)),
            full(p["ws"].shape), full(p["cs"].shape),
            full(p["wg"].shape), full(p["cg"].shape),
            full(p["wo"].shape), full(p["co"].shape),
        ],
        out_specs=pl.BlockSpec((1, 1, zdim), lambda b, t: (b, 0, 0)),
        scratch_shapes=[pltpu.VMEM((1, hidden), jnp.float32),
                        pltpu.VMEM((1, hidden), jnp.float32),
                        pltpu.VMEM((1, hidden), jnp.float32)],
        compiler_params=pltpu.CompilerParams(
            dimension_semantics=("parallel", "arbitrary"),
            vmem_limit_bytes=_VMEM_LIMIT),
        cost_estimate=pl.CostEstimate(flops=flops, transcendentals=transc,
                                      bytes_accessed=bytes_acc),
    )(xcat, p["ws"], p["cs"], p["wg"], p["cg"], p["wo"], p["co"])
    return out[:, 0, :]


def att_dgcnn_encoder(pos, params, k=8):
    x1 = attn_edge_conv(pos, params["conv1"], k)     # (B, N, 32)
    x2 = attn_edge_conv(x1, params["conv2"], k)      # (B, N, 32)
    x3 = attn_edge_conv(x2, params["conv3"], k)      # (B, N, 64)
    x4 = attn_edge_conv(x3, params["conv4"], k)      # (B, N, 128)
    # lane-dense 256-wide head input -> single K=256 shared-MLP matmul
    xcat = jnp.concatenate([x1, x2, x3, x4], axis=-1)
    return head(xcat, params["head"])                # (B, zdim)


# ----------------------------------------------------------------------------
# Deterministic parameter construction (PyTorch-Linear-style init, BN folded)
# ----------------------------------------------------------------------------
def _linear(key, fan_in, fan_out):
    kw, kb = jax.random.split(key)
    bound = 1.0 / math.sqrt(fan_in)
    w = jax.random.uniform(kw, (fan_in, fan_out), jnp.float32, -bound, bound)
    b = jax.random.uniform(kb, (fan_out,), jnp.float32, -bound, bound)
    return w, b


def _fold_bn(w, b, c_out):
    # eval-mode BatchNorm1d with init stats: gamma=1, beta=0, mean=0, var=1.
    gamma = jnp.ones((c_out,), jnp.float32)
    beta = jnp.zeros((c_out,), jnp.float32)
    mean = jnp.zeros((c_out,), jnp.float32)
    var = jnp.ones((c_out,), jnp.float32)
    scale = gamma / jnp.sqrt(var + _BN_EPS)
    return w * scale[None, :], scale * (b - mean) + beta


def _make_edge_conv_params(key, cin, cout):
    k1, k2 = jax.random.split(key)
    w, b = _linear(k1, 2 * cin, cout)                 # edge MLP Linear(2*cin, cout)
    w, c1 = _fold_bn(w, b, cout)
    w_top, w_bot = w[:cin], w[cin:]                   # multiplies x_i / (x_j - x_i)
    wg, bg = _linear(k2, cout, 1)                     # gate MLP Linear(cout, 1)
    wg, cg = _fold_bn(wg, bg, 1)
    return dict(
        wa=(w_top - w_bot),                           # (cin, cout), multiplies x_i
        wb=w_bot,                                     # (cin, cout), multiplies x_j
        c1=c1.reshape(1, cout),
        wg=wg,                                        # (cout, 1) column vector
        cg=cg.reshape(1, 1),
    )


def _make_head_params(key, zdim):
    k1, k2, k3 = jax.random.split(key, 3)
    ws, bs = _linear(k1, 256, 512)
    ws, cs = _fold_bn(ws, bs, 512)
    wg, bg = _linear(k2, 512, 512)
    wg, cg = _fold_bn(wg, bg, 512)
    wo, bo = _linear(k3, 512, zdim)
    wo, co = _fold_bn(wo, bo, zdim)
    return dict(
        ws=ws.astype(MM_DTYPE), cs=cs.reshape(1, 512),     # single (256,512) weight
        wg=wg.astype(MM_DTYPE), cg=cg.reshape(1, 512),
        wo=wo, co=co.reshape(1, zdim),
    )


def init_params(key, zdim):
    k1, k2, k3, k4, k5 = jax.random.split(key, 5)
    return dict(
        conv1=_make_edge_conv_params(k1, 3, 32),
        conv2=_make_edge_conv_params(k2, 32, 32),
        conv3=_make_edge_conv_params(k3, 32, 64),
        conv4=_make_edge_conv_params(k4, 64, 128),
        head=_make_head_params(k5, zdim),
    )


# ----------------------------------------------------------------------------
if __name__ == "__main__":
    B, N, K, ZDIM = 2, 16, 8, 32

    key = jax.random.PRNGKey(0)
    k_pos, k_par = jax.random.split(key)
    pos = jax.random.normal(k_pos, (B, N, 3), dtype=jnp.float32)
    params = init_params(k_par, ZDIM)

    out = att_dgcnn_encoder(pos, params, k=K)
    out = jax.block_until_ready(out)

    assert out.shape == (B, ZDIM), out.shape
    assert bool(jnp.all(jnp.isfinite(out)))
    print("KERNEL_OK")
</pallas_src>

<mosaic_0001>
module attributes {stable_mosaic.version = 11 : i64} {
  func.func @edge_conv_kernel(%arg0: i32, %arg1: i32, %arg2: memref<1x16x3xf32, #tpu.memory_space<vmem>>, %arg3: memref<1x16x32xbf16, #tpu.memory_space<vmem>>, %arg4: memref<1x1x16xf32, #tpu.memory_space<vmem>>, %arg5: memref<3x32xf32, #tpu.memory_space<vmem>>, %arg6: memref<1x32xf32, #tpu.memory_space<vmem>>, %arg7: memref<32x1xf32, #tpu.memory_space<vmem>>, %arg8: memref<1x1xf32, #tpu.memory_space<vmem>>, %arg9: memref<1x16x32xf32, #tpu.memory_space<vmem>>, %arg10: memref<16x16xf32, #tpu.memory_space<vmem>>, %arg11: memref<128x16xbf16, #tpu.memory_space<vmem>>) attributes {dimension_semantics = [#tpu.dimension_semantics<parallel>, #tpu.dimension_semantics<parallel>], iteration_bounds = array<i64: 2, 1>, scalar_prefetch = 0 : i64, scratch_operands = 2 : i64, tpu.core_type = #tpu.core_type<tc>, window_params = [{transform_indices = @transform_0, window_bounds = array<i64: 1, 16, 3>}, {transform_indices = @transform_1, window_bounds = array<i64: 1, 16, 32>}, {transform_indices = @transform_2, window_bounds = array<i64: 1, 1, 16>}, {pipeline_mode = #tpu.pipeline_mode<synchronous>, transform_indices = @transform_3, window_bounds = array<i64: 3, 32>}, {pipeline_mode = #tpu.pipeline_mode<synchronous>, transform_indices = @transform_4, window_bounds = array<i64: 1, 32>}, {pipeline_mode = #tpu.pipeline_mode<synchronous>, transform_indices = @transform_5, window_bounds = array<i64: 32, 1>}, {pipeline_mode = #tpu.pipeline_mode<synchronous>, transform_indices = @transform_6, window_bounds = array<i64: 1, 1>}, {transform_indices = @transform_7, window_bounds = array<i64: 1, 16, 32>}]} {
    %c0 = arith.constant 0 : index
    %c0_0 = arith.constant 0 : index
    %c0_1 = arith.constant 0 : index
    %0 = vector.load %arg2[%c0, %c0_0, %c0_1] : memref<1x16x3xf32, #tpu.memory_space<vmem>>, vector<1x16x3xf32>
    %1 = vector.shape_cast %0 : vector<1x16x3xf32> to vector<16x3xf32>
    %c16_i32 = arith.constant 16 : i32
    %2 = arith.muli %arg1, %c16_i32 : i32
    %3 = tpu.assume_multiple %2, 16 : i32
    %c0_i32 = arith.constant 0 : i32
    %c0_i32_2 = arith.constant 0 : i32
    %c0_i32_3 = arith.constant 0 : i32
    %4 = tpu.memref_slice %arg2[%c0_i32, %c0_i32_2, %c0_i32_3] : memref<1x16x3xf32, #tpu.memory_space<vmem>> -> memref<1x16x3xf32, #tpu.memory_space<vmem>>
    %5 = tpu.memref_squeeze %4 : memref<1x16x3xf32, #tpu.memory_space<vmem>> -> memref<16x3xf32, #tpu.memory_space<vmem>>
    %6 = arith.index_cast %3 : i32 to index
    %c0_4 = arith.constant 0 : index
    %7 = vector.load %5[%6, %c0_4] : memref<16x3xf32, #tpu.memory_space<vmem>>, vector<16x3xf32>
    %cst = arith.constant dense<0.000000e+00> : vector<16x16xf32>
    %8 = tpu.matmul %7, %1, %cst {dimension_numbers = #tpu.dot_dimension_numbers<[1], [1], [0], [0], [0, 0, 1, 0], [], []>} : vector<16x3xf32>, vector<16x3xf32>, vector<16x16xf32> -> vector<16x16xf32>
    %c0_5 = arith.constant 0 : index
    %c0_6 = arith.constant 0 : index
    %c0_7 = arith.constant 0 : index
    %9 = vector.load %arg4[%c0_5, %c0_6, %c0_7] : memref<1x1x16xf32, #tpu.memory_space<vmem>>, vector<1x1x16xf32>
    %10 = vector.shape_cast %9 : vector<1x1x16xf32> to vector<1x16xf32>
    %cst_8 = arith.constant 2.000000e+00 : f32
    %11 = vector.broadcast %cst_8 : f32 to vector<16x16xf32>
    %12 = arith.mulf %11, %8 : vector<16x16xf32>
    %13 = vector.broadcast %10 : vector<1x16xf32> to vector<16x16xf32>
    %14 = arith.subf %13, %12 : vector<16x16xf32>
    %c0_9 = arith.constant 0 : index
    %c0_10 = arith.constant 0 : index
    %15 = vector.load %arg10[%c0_9, %c0_10] : memref<16x16xf32, #tpu.memory_space<vmem>>, vector<16x16xf32>
    tpu.vector_store %arg10[%c0_9, %c0_10], %14 {strides = array<i32>} : memref<16x16xf32, #tpu.memory_space<vmem>>, vector<16x16xf32>,
    %16 = tpu.iota {dimensions = array<i32: 1>} : vector<16x16xi32>
    %c0_11 = arith.constant 0 : index
    %c0_12 = arith.constant 0 : index
    %17 = vector.load %arg10[%c0_11, %c0_12] : memref<16x16xf32, #tpu.memory_space<vmem>>, vector<16x16xf32>
    %cst_13 = arith.constant dense<0x7F800000> : vector<16xf32>
    %18 = vector.multi_reduction <minimumf>, %17, %cst_13 [1] : vector<16x16xf32> to vector<16xf32>
    %19 = vector.shape_cast %18 : vector<16xf32> to vector<16x1xf32>
    %20 = vector.broadcast %19 : vector<16x1xf32> to vector<16x16xf32>
    %21 = arith.cmpf ole, %17, %20 : vector<16x16xf32>
    %c16_i32_14 = arith.constant 16 : i32
    %22 = vector.broadcast %c16_i32_14 : i32 to vector<16x16xi32>
    %23 = arith.select %21, %16, %22 : vector<16x16xi1>, vector<16x16xi32>
    %cst_15 = arith.constant dense<2147483647> : vector<16xi32>
    %24 = vector.multi_reduction <minsi>, %23, %cst_15 [1] : vector<16x16xi32> to vector<16xi32>
    %25 = vector.shape_cast %24 : vector<16xi32> to vector<16x1xi32>
    %26 = vector.broadcast %25 : vector<16x1xi32> to vector<16x16xi32>
    %27 = arith.cmpi eq, %16, %26 : vector<16x16xi32>
    %cst_16 = arith.constant 0x7F800000 : f32
    %28 = vector.broadcast %cst_16 : f32 to vector<16x16xf32>
    %29 = arith.select %27, %28, %17 : vector<16x16xi1>, vector<16x16xf32>
    %c0_17 = arith.constant 0 : index
    %c0_18 = arith.constant 0 : index
    %30 = vector.load %arg10[%c0_17, %c0_18] : memref<16x16xf32, #tpu.memory_space<vmem>>, vector<16x16xf32>
    tpu.vector_store %arg10[%c0_17, %c0_18], %29 {strides = array<i32>} : memref<16x16xf32, #tpu.memory_space<vmem>>, vector<16x16xf32>,
    %cst_19 = arith.constant 1.000000e+00 : f32
    %cst_20 = arith.constant 0.000000e+00 : f32
    %31 = vector.broadcast %cst_19 : f32 to vector<16x16xf32>
    %32 = vector.broadcast %cst_20 : f32 to vector<16x16xf32>
    %33 = arith.select %27, %31, %32 : vector<16x16xi1>, vector<16x16xf32>
    %34 = arith.truncf %33 : vector<16x16xf32> to vector<16x16xbf16>
    %c0_21 = arith.constant 0 : index
    %c0_22 = arith.constant 0 : index
    %35 = vector.load %arg11[%c0_21, %c0_22] : memref<128x16xbf16, #tpu.memory_space<vmem>>, vector<16x16xbf16>
    tpu.vector_store %arg11[%c0_21, %c0_22], %34 {strides = array<i32>} : memref<128x16xbf16, #tpu.memory_space<vmem>>, vector<16x16xbf16>,
    %c0_23 = arith.constant 0 : index
    %c0_24 = arith.constant 0 : index
    %36 = vector.load %arg10[%c0_23, %c0_24] : memref<16x16xf32, #tpu.memory_space<vmem>>, vector<16x16xf32>
    %cst_25 = arith.constant dense<0x7F800000> : vector<16xf32>
    %37 = vector.multi_reduction <minimumf>, %36, %cst_25 [1] : vector<16x16xf32> to vector<16xf32>
    %38 = vector.shape_cast %37 : vector<16xf32> to vector<16x1xf32>
    %39 = vector.broadcast %38 : vector<16x1xf32> to vector<16x16xf32>
    %40 = arith.cmpf ole, %36, %39 : vector<16x16xf32>
    %c16_i32_26 = arith.constant 16 : i32
    %41 = vector.broadcast %c16_i32_26 : i32 to vector<16x16xi32>
    %42 = arith.select %40, %16, %41 : vector<16x16xi1>, vector<16x16xi32>
    %cst_27 = arith.constant dense<2147483647> : vector<16xi32>
    %43 = vector.multi_reduction <minsi>, %42, %cst_27 [1] : vector<16x16xi32> to vector<16xi32>
    %44 = vector.shape_cast %43 : vector<16xi32> to vector<16x1xi32>
    %45 = vector.broadcast %44 : vector<16x1xi32> to vector<16x16xi32>
    %46 = arith.cmpi eq, %16, %45 : vector<16x16xi32>
    %cst_28 = arith.constant 0x7F800000 : f32
    %47 = vector.broadcast %cst_28 : f32 to vector<16x16xf32>
    %48 = arith.select %46, %47, %36 : vector<16x16xi1>, vector<16x16xf32>
    %c0_29 = arith.constant 0 : index
    %c0_30 = arith.constant 0 : index
    %49 = vector.load %arg10[%c0_29, %c0_30] : memref<16x16xf32, #tpu.memory_space<vmem>>, vector<16x16xf32>
    tpu.vector_store %arg10[%c0_29, %c0_30], %48 {strides = array<i32>} : memref<16x16xf32, #tpu.memory_space<vmem>>, vector<16x16xf32>,
    %cst_31 = arith.constant 1.000000e+00 : f32
    %cst_32 = arith.constant 0.000000e+00 : f32
    %50 = vector.broadcast %cst_31 : f32 to vector<16x16xf32>
    %51 = vector.broadcast %cst_32 : f32 to vector<16x16xf32>
    %52 = arith.select %46, %50, %51 : vector<16x16xi1>, vector<16x16xf32>
    %53 = arith.truncf %52 : vector<16x16xf32> to vector<16x16xbf16>
    %c16 = arith.constant 16 : index
    %c0_33 = arith.constant 0 : index
    %54 = vector.load %arg11[%c16, %c0_33] : memref<128x16xbf16, #tpu.memory_space<vmem>>, vector<16x16xbf16>
    tpu.vector_store %arg11[%c16, %c0_33], %53 {strides = array<i32>} : memref<128x16xbf16, #tpu.memory_space<vmem>>, vector<16x16xbf16>,
    %c0_34 = arith.constant 0 : index
    %c0_35 = arith.constant 0 : index
    %55 = vector.load %arg10[%c0_34, %c0_35] : memref<16x16xf32, #tpu.memory_space<vmem>>, vector<16x16xf32>
    %cst_36 = arith.constant dense<0x7F800000> : vector<16xf32>
    %56 = vector.multi_reduction <minimumf>, %55, %cst_36 [1] : vector<16x16xf32> to vector<16xf32>
    %57 = vector.shape_cast %56 : vector<16xf32> to vector<16x1xf32>
    %58 = vector.broadcast %57 : vector<16x1xf32> to vector<16x16xf32>
    %59 = arith.cmpf ole, %55, %58 : vector<16x16xf32>
    %c16_i32_37 = arith.constant 16 : i32
    %60 = vector.broadcast %c16_i32_37 : i32 to vector<16x16xi32>
    %61 = arith.select %59, %16, %60 : vector<16x16xi1>, vector<16x16xi32>
    %cst_38 = arith.constant dense<2147483647> : vector<16xi32>
    %62 = vector.multi_reduction <minsi>, %61, %cst_38 [1] : vector<16x16xi32> to vector<16xi32>
    %63 = vector.shape_cast %62 : vector<16xi32> to vector<16x1xi32>
    %64 = vector.broadcast %63 : vector<16x1xi32> to vector<16x16xi32>
    %65 = arith.cmpi eq, %16, %64 : vector<16x16xi32>
    %cst_39 = arith.constant 0x7F800000 : f32
    %66 = vector.broadcast %cst_39 : f32 to vector<16x16xf32>
    %67 = arith.select %65, %66, %55 : vector<16x16xi1>, vector<16x16xf32>
    %c0_40 = arith.constant 0 : index
    %c0_41 = arith.constant 0 : index
    %68 = vector.load %arg10[%c0_40, %c0_41] : memref<16x16xf32, #tpu.memory_space<vmem>>, vector<16x16xf32>
    tpu.vector_store %arg10[%c0_40, %c0_41], %67 {strides = array<i32>} : memref<16x16xf32, #tpu.memory_space<vmem>>, vector<16x16xf32>,
    %cst_42 = arith.constant 1.000000e+00 : f32
    %cst_43 = arith.constant 0.000000e+00 : f32
    %69 = vector.broadcast %cst_42 : f32 to vector<16x16xf32>
    %70 = vector.broadcast %cst_43 : f32 to vector<16x16xf32>
    %71 = arith.select %65, %69, %70 : vector<16x16xi1>, vector<16x16xf32>
    %72 = arith.truncf %71 : vector<16x16xf32> to vector<16x16xbf16>
    %c32 = arith.constant 32 : index
    %c0_44 = arith.constant 0 : index
    %73 = vector.load %arg11[%c32, %c0_44] : memref<128x16xbf16, #tpu.memory_space<vmem>>, vector<16x16xbf16>
    tpu.vector_store %arg11[%c32, %c0_44], %72 {strides = array<i32>} : memref<128x16xbf16, #tpu.memory_space<vmem>>, vector<16x16xbf16>,
    %c0_45 = arith.constant 0 : index
    %c0_46 = arith.constant 0 : index
    %74 = vector.load %arg10[%c0_45, %c0_46] : memref<16x16xf32, #tpu.memory_space<vmem>>, vector<16x16xf32>
    %cst_47 = arith.constant dense<0x7F800000> : vector<16xf32>
    %75 = vector.multi_reduction <minimumf>, %74, %cst_47 [1] : vector<16x16xf32> to vector<16xf32>
    %76 = vector.shape_cast %75 : vector<16xf32> to vector<16x1xf32>
    %77 = vector.broadcast %76 : vector<16x1xf32> to vector<16x16xf32>
    %78 = arith.cmpf ole, %74, %77 : vector<16x16xf32>
    %c16_i32_48 = arith.constant 16 : i32
    %79 = vector.broadcast %c16_i32_48 : i32 to vector<16x16xi32>
    %80 = arith.select %78, %16, %79 : vector<16x16xi1>, vector<16x16xi32>
    %cst_49 = arith.constant dense<2147483647> : vector<16xi32>
    %81 = vector.multi_reduction <minsi>, %80, %cst_49 [1] : vector<16x16xi32> to vector<16xi32>
    %82 = vector.shape_cast %81 : vector<16xi32> to vector<16x1xi32>
    %83 = vector.broadcast %82 : vector<16x1xi32> to vector<16x16xi32>
    %84 = arith.cmpi eq, %16, %83 : vector<16x16xi32>
    %cst_50 = arith.constant 0x7F800000 : f32
    %85 = vector.broadcast %cst_50 : f32 to vector<16x16xf32>
    %86 = arith.select %84, %85, %74 : vector<16x16xi1>, vector<16x16xf32>
    %c0_51 = arith.constant 0 : index
    %c0_52 = arith.constant 0 : index
    %87 = vector.load %arg10[%c0_51, %c0_52] : memref<16x16xf32, #tpu.memory_space<vmem>>, vector<16x16xf32>
    tpu.vector_store %arg10[%c0_51, %c0_52], %86 {strides = array<i32>} : memref<16x16xf32, #tpu.memory_space<vmem>>, vector<16x16xf32>,
    %cst_53 = arith.constant 1.000000e+00 : f32
    %cst_54 = arith.constant 0.000000e+00 : f32
    %88 = vector.broadcast %cst_53 : f32 to vector<16x16xf32>
    %89 = vector.broadcast %cst_54 : f32 to vector<16x16xf32>
    %90 = arith.select %84, %88, %89 : vector<16x16xi1>, vector<16x16xf32>
    %91 = arith.truncf %90 : vector<16x16xf32> to vector<16x16xbf16>
    %c48 = arith.constant 48 : index
    %c0_55 = arith.constant 0 : index
    %92 = vector.load %arg11[%c48, %c0_55] : memref<128x16xbf16, #tpu.memory_space<vmem>>, vector<16x16xbf16>
    tpu.vector_store %arg11[%c48, %c0_55], %91 {strides = array<i32>} : memref<128x16xbf16, #tpu.memory_space<vmem>>, vector<16x16xbf16>,
    %c0_56 = arith.constant 0 : index
    %c0_57 = arith.constant 0 : index
    %93 = vector.load %arg10[%c0_56, %c0_57] : memref<16x16xf32, #tpu.memory_space<vmem>>, vector<16x16xf32>
    %cst_58 = arith.constant dense<0x7F800000> : vector<16xf32>
    %94 = vector.multi_reduction <minimumf>, %93, %cst_58 [1] : vector<16x16xf32> to vector<16xf32>
    %95 = vector.shape_cast %94 : vector<16xf32> to vector<16x1xf32>
    %96 = vector.broadcast %95 : vector<16x1xf32> to vector<16x16xf32>
    %97 = arith.cmpf ole, %93, %96 : vector<16x16xf32>
    %c16_i32_59 = arith.constant 16 : i32
    %98 = vector.broadcast %c16_i32_59 : i32 to vector<16x16xi32>
    %99 = arith.select %97, %16, %98 : vector<16x16xi1>, vector<16x16xi32>
    %cst_60 = arith.constant dense<2147483647> : vector<16xi32>
    %100 = vector.multi_reduction <minsi>, %99, %cst_60 [1] : vector<16x16xi32> to vector<16xi32>
    %101 = vector.shape_cast %100 : vector<16xi32> to vector<16x1xi32>
    %102 = vector.broadcast %101 : vector<16x1xi32> to vector<16x16xi32>
    %103 = arith.cmpi eq, %16, %102 : vector<16x16xi32>
    %cst_61 = arith.constant 0x7F800000 : f32
    %104 = vector.broadcast %cst_61 : f32 to vector<16x16xf32>
    %105 = arith.select %103, %104, %93 : vector<16x16xi1>, vector<16x16xf32>
    %c0_62 = arith.constant 0 : index
    %c0_63 = arith.constant 0 : index
    %106 = vector.load %arg10[%c0_62, %c0_63] : memref<16x16xf32, #tpu.memory_space<vmem>>, vector<16x16xf32>
    tpu.vector_store %arg10[%c0_62, %c0_63], %105 {strides = array<i32>} : memref<16x16xf32, #tpu.memory_space<vmem>>, vector<16x16xf32>,
    %cst_64 = arith.constant 1.000000e+00 : f32
    %cst_65 = arith.constant 0.000000e+00 : f32
    %107 = vector.broadcast %cst_64 : f32 to vector<16x16xf32>
    %108 = vector.broadcast %cst_65 : f32 to vector<16x16xf32>
    %109 = arith.select %103, %107, %108 : vector<16x16xi1>, vector<16x16xf32>
    %110 = arith.truncf %109 : vector<16x16xf32> to vector<16x16xbf16>
    %c64 = arith.constant 64 : index
    %c0_66 = arith.constant 0 : index
    %111 = vector.load %arg11[%c64, %c0_66] : memref<128x16xbf16, #tpu.memory_space<vmem>>, vector<16x16xbf16>
    tpu.vector_store %arg11[%c64, %c0_66], %110 {strides = array<i32>} : memref<128x16xbf16, #tpu.memory_space<vmem>>, vector<16x16xbf16>,
    %c0_67 = arith.constant 0 : index
    %c0_68 = arith.constant 0 : index
    %112 = vector.load %arg10[%c0_67, %c0_68] : memref<16x16xf32, #tpu.memory_space<vmem>>, vector<16x16xf32>
    %cst_69 = arith.constant dense<0x7F800000> : vector<16xf32>
    %113 = vector.multi_reduction <minimumf>, %112, %cst_69 [1] : vector<16x16xf32> to vector<16xf32>
    %114 = vector.shape_cast %113 : vector<16xf32> to vector<16x1xf32>
    %115 = vector.broadcast %114 : vector<16x1xf32> to vector<16x16xf32>
    %116 = arith.cmpf ole, %112, %115 : vector<16x16xf32>
    %c16_i32_70 = arith.constant 16 : i32
    %117 = vector.broadcast %c16_i32_70 : i32 to vector<16x16xi32>
    %118 = arith.select %116, %16, %117 : vector<16x16xi1>, vector<16x16xi32>
    %cst_71 = arith.constant dense<2147483647> : vector<16xi32>
    %119 = vector.multi_reduction <minsi>, %118, %cst_71 [1] : vector<16x16xi32> to vector<16xi32>
    %120 = vector.shape_cast %119 : vector<16xi32> to vector<16x1xi32>
    %121 = vector.broadcast %120 : vector<16x1xi32> to vector<16x16xi32>
    %122 = arith.cmpi eq, %16, %121 : vector<16x16xi32>
    %cst_72 = arith.constant 0x7F800000 : f32
    %123 = vector.broadcast %cst_72 : f32 to vector<16x16xf32>
    %124 = arith.select %122, %123, %112 : vector<16x16xi1>, vector<16x16xf32>
    %c0_73 = arith.constant 0 : index
    %c0_74 = arith.constant 0 : index
    %125 = vector.load %arg10[%c0_73, %c0_74] : memref<16x16xf32, #tpu.memory_space<vmem>>, vector<16x16xf32>
    tpu.vector_store %arg10[%c0_73, %c0_74], %124 {strides = array<i32>} : memref<16x16xf32, #tpu.memory_space<vmem>>, vector<16x16xf32>,
    %cst_75 = arith.constant 1.000000e+00 : f32
    %cst_76 = arith.constant 0.000000e+00 : f32
    %126 = vector.broadcast %cst_75 : f32 to vector<16x16xf32>
    %127 = vector.broadcast %cst_76 : f32 to vector<16x16xf32>
    %128 = arith.select %122, %126, %127 : vector<16x16xi1>, vector<16x16xf32>
    %129 = arith.truncf %128 : vector<16x16xf32> to vector<16x16xbf16>
    %c80 = arith.constant 80 : index
    %c0_77 = arith.constant 0 : index
    %130 = vector.load %arg11[%c80, %c0_77] : memref<128x16xbf16, #tpu.memory_space<vmem>>, vector<16x16xbf16>
    tpu.vector_store %arg11[%c80, %c0_77], %129 {strides = array<i32>} : memref<128x16xbf16, #tpu.memory_space<vmem>>, vector<16x16xbf16>,
    %c0_78 = arith.constant 0 : index
    %c0_79 = arith.constant 0 : index
    %131 = vector.load %arg10[%c0_78, %c0_79] : memref<16x16xf32, #tpu.memory_space<vmem>>, vector<16x16xf32>
    %cst_80 = arith.constant dense<0x7F800000> : vector<16xf32>
    %132 = vector.multi_reduction <minimumf>, %131, %cst_80 [1] : vector<16x16xf32> to vector<16xf32>
    %133 = vector.shape_cast %132 : vector<16xf32> to vector<16x1xf32>
    %134 = vector.broadcast %133 : vector<16x1xf32> to vector<16x16xf32>
    %135 = arith.cmpf ole, %131, %134 : vector<16x16xf32>
    %c16_i32_81 = arith.constant 16 : i32
    %136 = vector.broadcast %c16_i32_81 : i32 to vector<16x16xi32>
    %137 = arith.select %135, %16, %136 : vector<16x16xi1>, vector<16x16xi32>
    %cst_82 = arith.constant dense<2147483647> : vector<16xi32>
    %138 = vector.multi_reduction <minsi>, %137, %cst_82 [1] : vector<16x16xi32> to vector<16xi32>
    %139 = vector.shape_cast %138 : vector<16xi32> to vector<16x1xi32>
    %140 = vector.broadcast %139 : vector<16x1xi32> to vector<16x16xi32>
    %141 = arith.cmpi eq, %16, %140 : vector<16x16xi32>
    %cst_83 = arith.constant 0x7F800000 : f32
    %142 = vector.broadcast %cst_83 : f32 to vector<16x16xf32>
    %143 = arith.select %141, %142, %131 : vector<16x16xi1>, vector<16x16xf32>
    %c0_84 = arith.constant 0 : index
    %c0_85 = arith.constant 0 : index
    %144 = vector.load %arg10[%c0_84, %c0_85] : memref<16x16xf32, #tpu.memory_space<vmem>>, vector<16x16xf32>
    tpu.vector_store %arg10[%c0_84, %c0_85], %143 {strides = array<i32>} : memref<16x16xf32, #tpu.memory_space<vmem>>, vector<16x16xf32>,
    %cst_86 = arith.constant 1.000000e+00 : f32
    %cst_87 = arith.constant 0.000000e+00 : f32
    %145 = vector.broadcast %cst_86 : f32 to vector<16x16xf32>
    %146 = vector.broadcast %cst_87 : f32 to vector<16x16xf32>
    %147 = arith.select %141, %145, %146 : vector<16x16xi1>, vector<16x16xf32>
    %148 = arith.truncf %147 : vector<16x16xf32> to vector<16x16xbf16>
    %c96 = arith.constant 96 : index
    %c0_88 = arith.constant 0 : index
    %149 = vector.load %arg11[%c96, %c0_88] : memref<128x16xbf16, #tpu.memory_space<vmem>>, vector<16x16xbf16>
    tpu.vector_store %arg11[%c96, %c0_88], %148 {strides = array<i32>} : memref<128x16xbf16, #tpu.memory_space<vmem>>, vector<16x16xbf16>,
    %c0_89 = arith.constant 0 : index
    %c0_90 = arith.constant 0 : index
    %150 = vector.load %arg10[%c0_89, %c0_90] : memref<16x16xf32, #tpu.memory_space<vmem>>, vector<16x16xf32>
    %cst_91 = arith.constant dense<0x7F800000> : vector<16xf32>
    %151 = vector.multi_reduction <minimumf>, %150, %cst_91 [1] : vector<16x16xf32> to vector<16xf32>
    %152 = vector.shape_cast %151 : vector<16xf32> to vector<16x1xf32>
    %153 = vector.broadcast %152 : vector<16x1xf32> to vector<16x16xf32>
    %154 = arith.cmpf ole, %150, %153 : vector<16x16xf32>
    %c16_i32_92 = arith.constant 16 : i32
    %155 = vector.broadcast %c16_i32_92 : i32 to vector<16x16xi32>
    %156 = arith.select %154, %16, %155 : vector<16x16xi1>, vector<16x16xi32>
    %cst_93 = arith.constant dense<2147483647> : vector<16xi32>
    %157 = vector.multi_reduction <minsi>, %156, %cst_93 [1] : vector<16x16xi32> to vector<16xi32>
    %158 = vector.shape_cast %157 : vector<16xi32> to vector<16x1xi32>
    %159 = vector.broadcast %158 : vector<16x1xi32> to vector<16x16xi32>
    %160 = arith.cmpi eq, %16, %159 : vector<16x16xi32>
    %cst_94 = arith.constant 0x7F800000 : f32
    %161 = vector.broadcast %cst_94 : f32 to vector<16x16xf32>
    %162 = arith.select %160, %161, %150 : vector<16x16xi1>, vector<16x16xf32>
    %c0_95 = arith.constant 0 : index
    %c0_96 = arith.constant 0 : index
    %163 = vector.load %arg10[%c0_95, %c0_96] : memref<16x16xf32, #tpu.memory_space<vmem>>, vector<16x16xf32>
    tpu.vector_store %arg10[%c0_95, %c0_96], %162 {strides = array<i32>} : memref<16x16xf32, #tpu.memory_space<vmem>>, vector<16x16xf32>,
    %cst_97 = arith.constant 1.000000e+00 : f32
    %cst_98 = arith.constant 0.000000e+00 : f32
    %164 = vector.broadcast %cst_97 : f32 to vector<16x16xf32>
    %165 = vector.broadcast %cst_98 : f32 to vector<16x16xf32>
    %166 = arith.select %160, %164, %165 : vector<16x16xi1>, vector<16x16xf32>
    %167 = arith.truncf %166 : vector<16x16xf32> to vector<16x16xbf16>
    %c112 = arith.constant 112 : index
    %c0_99 = arith.constant 0 : index
    %168 = vector.load %arg11[%c112, %c0_99] : memref<128x16xbf16, #tpu.memory_space<vmem>>, vector<16x16xbf16>
    tpu.vector_store %arg11[%c112, %c0_99], %167 {strides = array<i32>} : memref<128x16xbf16, #tpu.memory_space<vmem>>, vector<16x16xbf16>,
    %c0_100 = arith.constant 0 : index
    %c0_101 = arith.constant 0 : index
    %169 = vector.load %arg5[%c0_100, %c0_101] : memref<3x32xf32, #tpu.memory_space<vmem>>, vector<3x32xf32>
    %cst_102 = arith.constant dense<0.000000e+00> : vector<16x32xf32>
    %170 = tpu.matmul %7, %169, %cst_102 {dimension_numbers = #tpu.dot_dimension_numbers<[1], [0], [0], [1], [0, 0, 1, 1], [], []>} : vector<16x3xf32>, vector<3x32xf32>, vector<16x32xf32> -> vector<16x32xf32>
    %c0_103 = arith.constant 0 : index
    %c0_104 = arith.constant 0 : index
    %171 = vector.load %arg6[%c0_103, %c0_104] : memref<1x32xf32, #tpu.memory_space<vmem>>, vector<1x32xf32>
    %172 = vector.broadcast %171 : vector<1x32xf32> to vector<16x32xf32>
    %173 = arith.addf %170, %172 : vector<16x32xf32>
    %c0_105 = arith.constant 0 : index
    %c0_106 = arith.constant 0 : index
    %174 = vector.load %arg11[%c0_105, %c0_106] : memref<128x16xbf16, #tpu.memory_space<vmem>>, vector<128x16xbf16>
    %c0_107 = arith.constant 0 : index
    %c0_108 = arith.constant 0 : index
    %c0_109 = arith.constant 0 : index
    %175 = vector.load %arg3[%c0_107, %c0_108, %c0_109] : memref<1x16x32xbf16, #tpu.memory_space<vmem>>, vector<1x16x32xbf16>
    %176 = vector.shape_cast %175 : vector<1x16x32xbf16> to vector<16x32xbf16>
    %cst_110 = arith.constant dense<0.000000e+00> : vector<128x32xf32>
    %177 = tpu.matmul %174, %176, %cst_110 {dimension_numbers = #tpu.dot_dimension_numbers<[1], [0], [0], [1], [0, 0, 1, 1], [], []>} : vector<128x16xbf16>, vector<16x32xbf16>, vector<128x32xf32> -> vector<128x32xf32>
    %178 = vector.shape_cast %177 : vector<128x32xf32> to vector<8x16x32xf32>
    %179 = vector.shape_cast %173 : vector<16x32xf32> to vector<1x16x32xf32>
    %180 = vector.broadcast %179 : vector<1x16x32xf32> to vector<8x16x32xf32>
    %181 = arith.addf %178, %180 : vector<8x16x32xf32>
    %182 = arith.negf %181 : vector<8x16x32xf32>
    %183 = math.exp %182 : vector<8x16x32xf32>
    %cst_111 = arith.constant 1.000000e+00 : f32
    %184 = vector.broadcast %cst_111 : f32 to vector<8x16x32xf32>
    %185 = arith.addf %184, %183 : vector<8x16x32xf32>
    %186 = arith.divf %184, %185 : vector<8x16x32xf32>
    %187 = arith.mulf %181, %186 : vector<8x16x32xf32>
    %c0_112 = arith.constant 0 : index
    %c0_113 = arith.constant 0 : index
    %188 = vector.load %arg7[%c0_112, %c0_113] : memref<32x1xf32, #tpu.memory_space<vmem>>, vector<32x1xf32>
    %189 = vector.shape_cast %187 : vector<8x16x32xf32> to vector<128x32xf32>
    %cst_114 = arith.constant dense<0.000000e+00> : vector<128x1xf32>
    %190 = tpu.matmul %189, %188, %cst_114 {dimension_numbers = #tpu.dot_dimension_numbers<[1], [0], [0], [1], [0, 0, 1, 1], [], []>} : vector<128x32xf32>, vector<32x1xf32>, vector<128x1xf32> -> vector<128x1xf32>
    %191 = vector.shape_cast %190 : vector<128x1xf32> to vector<8x16x1xf32>
    %c0_115 = arith.constant 0 : index
    %c0_116 = arith.constant 0 : index
    %192 = vector.load %arg8[%c0_115, %c0_116] : memref<1x1xf32, #tpu.memory_space<vmem>>, vector<1x1xf32>
    %193 = vector.shape_cast %192 : vector<1x1xf32> to vector<1x1x1xf32>
    %194 = vector.broadcast %193 : vector<1x1x1xf32> to vector<8x16x1xf32>
    %195 = arith.addf %191, %194 : vector<8x16x1xf32>
    %196 = arith.negf %195 : vector<8x16x1xf32>
    %197 = math.exp %196 : vector<8x16x1xf32>
    %cst_117 = arith.constant 1.000000e+00 : f32
    %198 = vector.broadcast %cst_117 : f32 to vector<8x16x1xf32>
    %199 = arith.addf %198, %197 : vector<8x16x1xf32>
    %200 = arith.divf %198, %199 : vector<8x16x1xf32>
    %201 = arith.mulf %195, %200 : vector<8x16x1xf32>
    %cst_118 = arith.constant dense<0xFF800000> : vector<16x1xf32>
    %202 = vector.multi_reduction <maximumf>, %201, %cst_118 [0] : vector<8x16x1xf32> to vector<16x1xf32>
    %203 = vector.shape_cast %202 : vector<16x1xf32> to vector<1x16x1xf32>
    %204 = vector.broadcast %203 : vector<1x16x1xf32> to vector<8x16x1xf32>
    %205 = arith.subf %201, %204 : vector<8x16x1xf32>
    %206 = math.exp %205 : vector<8x16x1xf32>
    %cst_119 = arith.constant dense<0.000000e+00> : vector<16x1xf32>
    %207 = vector.multi_reduction <add>, %206, %cst_119 [0] : vector<8x16x1xf32> to vector<16x1xf32>
    %208 = vector.broadcast %206 : vector<8x16x1xf32> to vector<8x16x32xf32>
    %209 = arith.mulf %208, %187 : vector<8x16x32xf32>
    %cst_120 = arith.constant dense<0.000000e+00> : vector<16x32xf32>
    %210 = vector.multi_reduction <add>, %209, %cst_120 [0] : vector<8x16x32xf32> to vector<16x32xf32>
    %211 = vector.broadcast %207 : vector<16x1xf32> to vector<16x32xf32>
    %212 = arith.divf %210, %211 : vector<16x32xf32>
    %c0_121 = arith.constant 0 : index
    %c0_122 = arith.constant 0 : index
    %c0_123 = arith.constant 0 : index
    %213 = vector.load %arg9[%c0_121, %c0_122, %c0_123] : memref<1x16x32xf32, #tpu.memory_space<vmem>>, vector<1x16x32xf32>
    %214 = vector.shape_cast %213 : vector<1x16x32xf32> to vector<16x32xf32>
    %215 = vector.shape_cast %212 : vector<16x32xf32> to vector<1x16x32xf32>
    tpu.vector_store %arg9[%c0_121, %c0_122, %c0_123], %215 {strides = array<i32>} : memref<1x16x32xf32, #tpu.memory_space<vmem>>, vector<1x16x32xf32>,
    return
  }
  func.func @transform_0(%arg0: i32, %arg1: i32) -> (i32, i32, i32) {
    %c0_i32 = arith.constant 0 : i32
    %c0_i32_0 = arith.constant 0 : i32
    %c0_i32_1 = arith.constant 0 : i32
    return %arg0, %c0_i32, %c0_i32_0 : i32, i32, i32
  }
  func.func @transform_1(%arg0: i32, %arg1: i32) -> (i32, i32, i32) {
    %c0_i32 = arith.constant 0 : i32
    %c0_i32_0 = arith.constant 0 : i32
    %c0_i32_1 = arith.constant 0 : i32
    return %arg0, %c0_i32, %c0_i32_0 : i32, i32, i32
  }
  func.func @transform_2(%arg0: i32, %arg1: i32) -> (i32, i32, i32) {
    %c0_i32 = arith.constant 0 : i32
    %c0_i32_0 = arith.constant 0 : i32
    %c0_i32_1 = arith.constant 0 : i32
    return %arg0, %c0_i32, %c0_i32_0 : i32, i32, i32
  }
  func.func @transform_3(%arg0: i32, %arg1: i32) -> (i32, i32) {
    %c0_i32 = arith.constant 0 : i32
    %c0_i32_0 = arith.constant 0 : i32
    %c0_i32_1 = arith.constant 0 : i32
    return %c0_i32, %c0_i32_0 : i32, i32
  }
  func.func @transform_4(%arg0: i32, %arg1: i32) -> (i32, i32) {
    %c0_i32 = arith.constant 0 : i32
    %c0_i32_0 = arith.constant 0 : i32
    %c0_i32_1 = arith.constant 0 : i32
    return %c0_i32, %c0_i32_0 : i32, i32
  }
  func.func @transform_5(%arg0: i32, %arg1: i32) -> (i32, i32) {
    %c0_i32 = arith.constant 0 : i32
    %c0_i32_0 = arith.constant 0 : i32
    %c0_i32_1 = arith.constant 0 : i32
    return %c0_i32, %c0_i32_0 : i32, i32
  }
  func.func @transform_6(%arg0: i32, %arg1: i32) -> (i32, i32) {
    %c0_i32 = arith.constant 0 : i32
    %c0_i32_0 = arith.constant 0 : i32
    %c0_i32_1 = arith.constant 0 : i32
    return %c0_i32, %c0_i32_0 : i32, i32
  }
  func.func @transform_7(%arg0: i32, %arg1: i32) -> (i32, i32, i32) {
    %c0_i32 = arith.constant 0 : i32
    %c0_i32_0 = arith.constant 0 : i32
    return %arg0, %arg1, %c0_i32 : i32, i32, i32
  }
}

</mosaic_0001>

<bundles_post_ra>
// kernel: tpu_custom_call.1
= control target key start
LH: loop header
LB: loop body
LE: loop exit
PB: predicated region body
PF: predicated region fallthrough
CT: control target
= control target key end

     0   :  { %s3075_s0 = inlined_call_operand.vmem [shape: f32[2,16,3], index: 0, kind: input, shape index: {}]   ;;  %s3076_s1 = inlined_call_operand.vmem [shape: bf16[2,16,32], index: 1, kind: input, shape index: {}]   ;;  %s3077_s2 = inlined_call_operand.vmem [shape: f32[2,1,16], index: 2, kind: input, shape index: {}]   ;;  %s3078_s3 = inlined_call_operand.vmem [shape: f32[3,32], index: 3, kind: input, shape index: {}]   ;;  %s3079_s4 = inlined_call_operand.vmem [shape: f32[1,32], index: 4, kind: input, shape index: {}]   ;;  %s3080_s5 = inlined_call_operand.vmem [shape: f32[32,1], index: 5, kind: input, shape index: {}]   ;;  %s3081_s6 = inlined_call_operand.<no memory space> [shape: f32[1,1], index: 6, kind: input, shape index: {}]   ;;  %s3082_s7 = inlined_call_operand.hbm [shape: f32[2,16,32], index: 7, kind: output, shape index: {}]  }
   0x1   :  { %v12_v0 = vstv %s3081_s6 }
   0x2   :  { %13 = vst [vmem:[#allocation4] sm:$0x1] %v12_v0 }
   0x3   :  { %14 = vsyncpa [#allocation6], 0 }
   0x4   :  { %16 = vsyncpa [#allocation6 + $0x1], 0  ;;  %s2458_s26 = smov 0   ;;  %s2460_s27 = smov 0  }
   0x5   :  { %s2462_s28 = smov 0   ;;  %s2464_s29 = smov 0  }
   0x6   :  { %s2466_s30 = smov 0   ;;  %s2468_s8 = smov 0  }
   0x7 LB: > { %s1903_s6 = sadd.s32 4294967295, %s2408_s8   ;;  %s1904_s9 = sadd.s32 4294967294, %s2408_s8   ;;  %s2408_s8 = sphi %s2468_s8, %s22_s8   ;;  %s2404_s30 = sphi %s2466_s30, %s3089_s30   ;;  %s2400_s29 = sphi %s2464_s29, %s3088_s29   ;;  %s2396_s28 = sphi %s2462_s28, %s3087_s28   ;;  %s2392_s27 = sphi %s2460_s27, %s3086_s27   ;;  %s2388_s26 = sphi %s2458_s26, %s3085_s26  }
   0x8   : > { %s34_s10 = sadd.s32 1, %s2404_s30  ;;  %s205_s11 = sadd.s32 1, %s2396_s28 }
   0x9   : > { %p36_p0 = scmp.ge.s32.totalorder %s34_s10, 2  ;;  %p215_p1 = scmp.ne.s32.totalorder %s2396_s28, %s2392_s27 }
   0xa   : > { %p216_p2 = scmp.eq.s32.totalorder %s1903_s6, 1  ;;  %p221_p3 = scmp.ne.s32.totalorder %s2392_s27, %s2388_s26 }
   0xb   : > { %s3091_s10 = smov (%p36_p0, %s34_s10), 0  ;;  %p222_p5 = scmp.eq.s32.totalorder %s1904_s9, 1 }
   0xc   : > { %p2498_p4 = por %p216_p2, %p215_p1  ;;  %s200_s13 = ssub.s32 %s2404_s30, %s3091_s10 }
   0xd   : > { %p1907_p6 = scmp.ge.s32.totalorder %s2408_s8, 1  ;;  %p203_p7 = scmp.eq.s32.totalorder %s200_s13, 0 }
   0xe   : > { %p2505_p8 = por %p222_p5, %p221_p3  ;;  %p274_p9 = scmp.lt.s32.totalorder %s2408_s8, 3 }
   0xf   : > { %s2511_s15 = scalar_select %p203_p7, %s2396_s28, %s205_s11  }
  0x10   : > { %p275_p10 = pnand %p1907_p6, %p274_p9 }
  0x11   : > { %p314_p11 = scmp.lt.s32.totalorder (!%p275_p10), %s2400_s29, 1  ;;  %vm335_vm0 = vcmask (!%p275_p10), 23552   ;;  %vm434_vm2 = vcmask (!%p275_p10), 130048   ;;  %v437_v15 = vlaneseq (!%p275_p10)  ;;  %v855_v35 = vld [vmem:[%s3078_s3] sm:$0x7] (!%p275_p10)  ;;  %vm863_vm7 = vcmask (!%p275_p10), 1042432  }
  0x12   : > { %278 = sbr.rel (%p275_p10) target bundleno = 4573 (0x11dd), region = 48  ;;  %vm2087_vm1 = vmpackc.low (!%p275_p10), %vm335_vm0, %vm335_vm0  ;;  %2031 = vmatprep.subr.msk.mxu1 (!%p275_p10), %vm863_vm7, %v855_v35  ;;  %v2410_v47 = vmov (!%p275_p10), 0.0   ;;  %s2412_s21 = smov (!%p275_p10), [#allocation5]  }
  0x13   : > { %v2534_v16 = vand.u32 (!%p275_p10), 127, %v437_v15  ;;  %2032 = vmatpush3.msk.msra.mxu1 (!%p275_p10), %vm863_vm7, %v855_v35  ;;  %v1207_v35 = vld [vmem:[%s3080_s5] sm:$0xff] (!%p275_p10)  ;;  %s2334_s22 = sshll.u32 (!%p275_p10), %s2412_s21, 4  ;;  %s2335_s22 = int_to_ptr.vmem [resolvable:$false] %s2334_s22 }
  0x19   : > { %s2515_s16 = scalar_select %p314_p11, %s2400_s29, 1 }
  0x1b   : > { %s1985_s17 = sshll.u32 %s2515_s16, 4  ;;  %s326_s23 = scalar_lea.vmem %s3077_s2, %s2515_s16 }
  0x1c   : > { %s318_s20 = scalar_lea.vmem %s3075_s0, %s1985_s17  ;;  %v1917_v5 = vld [vmem:[%s326_s23] ss:$0 sm:$0xff]  ;;  %s1986_s6 = sshll.u32 %s2515_s16, 3 }
  0x1d   : > { %v329_v1 = vld [vmem:[%s318_s20] sm:$0xff]  ;;  %v330_v2 = vld [vmem:[%s318_s20 + $0x8] sm:$0xff]  ;;  %s323_s13 = scalar_lea.vmem %s3076_s1, %s1986_s6  ;;  %s311_s6 = sand.u32 1, %s2392_s27  }
  0x1e   : > { %v2086_v3 = vpack.c.bf16 %v330_v2, %v329_v1  ;;  %2028 = vmatprep.mubr.msk.f32.mxu0 %vm335_vm0, %v329_v1  ;;  %2033 = vmatprep.mubr.msk.f32.mxu1 %vm335_vm0, %v329_v1  ;;  %s1908_s9 = sshll.u32 %s311_s6, 4  ;;  %s2336_s23 = scalar_lea.vmem %s2335_s22, 512 }
  0x1f   : > { %2034 = vmatmul.mubr.msk.f32.vlgmr.msra.gmra.mrb[0].mxu1 %vm335_vm0, %v330_v2  ;;  %s3000_s11 = scalar_lea.vmem [#allocation5], %s1908_s9 }
  0x20   : > { %2088 = vmatprep.subr.msk.bf16.mxu0 %vm2087_vm1, %v2086_v3  ;;  %s1807_s16 = sshll.u32 %s3000_s11, 4  ;;  %s3023_s16 = int_to_ptr.vmem [resolvable:$true] %s1807_s16 }
  0x21   : > { %2091 = vmatpush3.bf16.xpose.msk.msra.mxu0 %vm2087_vm1, %v2086_v3  ;;  %s2330_s20 = scalar_lea.vmem %s3023_s16, 256  ;;  %p2337_p1 = scmp.lt.s32.totalorder %s3023_s16, %s2335_s22 }
  0x22   : > { %p2331_p12 = scmp.ne.s32.totalorder %s3023_s16, %s2330_s20  ;;  %p2338_p2 = scmp.lt.s32.totalorder %s2336_s23, %s2330_s20 }
  0x24   : > { %p2332_p13 = pnand %p2331_p12, %p2498_p4  ;;  %p2339_p3 = por %p2338_p2, %p2337_p1 }
  0x26   : > { %p2333_p0 = pneg %p2332_p13 }
  0x28   : > { %2029 = vmatmul.mubr.msk.f32.vlgmr.msra.gmra.mrb[0].mxu0 %vm335_vm0, %v330_v2  ;;  %p2340_p5 = pnand %p2339_p3, %p2333_p0 }
  0xfb   : > { %v2030_v4 = vpop.f32.mrb[0].mxu0 }
  0xfc   : > { %v425_v6 = vmul.f32 2.0, %v2030_v4  ;;  %v414_v7 = vpop.f32.mrb[1].mxu0 }
  0xfd   : > { %v424_v8 = vmul.f32 2.0, %v414_v7 }
  0xfe   : > { %v433_v9 = vsub.f32 %v1917_v5, %v425_v6 }
  0xff   : > { %v432_v10 = vsub.f32 %v1917_v5, %v424_v8 }
 0x100   : > { %436 = vst.msk [vmem:[#allocation2 + $0x8] sm:$0xff] %vm434_vm2, %v433_v9 }
 0x101   : > { %435 = vst.msk [vmem:[#allocation2] sm:$0xff] %vm434_vm2, %v432_v10 }
 0x107   : > { %v440_v13 = vld [vmem:[#allocation2 + $0x8] sm:$0xff] }
 0x108   : > { %v439_v11 = vld [vmem:[#allocation2] sm:$0xff]  ;;  %v444_v14 = vsel %vm434_vm2, %v440_v13, inf }
 0x109   : > { %v441_v12 = vsel %vm434_vm2, %v439_v11, inf }
 0x10a   : > { %442 = vmin.xlane.f32.xlu0 %v441_v12 }
 0x10e   : > { %445 = vmin.xlane.f32.xlu0 %v444_v14 }
 0x197   : > { %v443_v17 = vpop.xlane.xlu0 %442 }
 0x198   : > { %vm447_vm3 = vcmp.le.f32.partialorder %v439_v11, %v443_v17 }
 0x199   : > { %v449_v18 = vsel %vm447_vm3, %v2534_v16, 16  ;;  %vm1211_vm3 = vcmask 261120  }
 0x19a   : > { %v451_v19 = vsel %vm434_vm2, %v449_v18, 2147483647 }
 0x19b   : > { %v446_v20 = vpop.xlane.xlu0 %445  ;;  %v453_v21 = vshra.s32 %v451_v19, 16  ;;  %v452_v27 = vand.u32 65535, %v451_v19 }
 0x19c   : > { %vm448_vm4 = vcmp.le.f32.partialorder %v440_v13, %v446_v20 }
 0x19d   : > { %v450_v22 = vsel %vm448_vm4, %v2534_v16, 16  ;;  %v455_v23 = vcvt.s32.f32 %v453_v21  ;;  %v454_v29 = vcvt.s32.f32 %v452_v27 }
 0x19e   : > { %v466_v24 = vsel %vm434_vm2, %v450_v22, 2147483647 }
 0x19f   : > { %456 = vmin.xlane.f32.xlu1 %v455_v23  ;;  %v468_v25 = vshra.s32 %v466_v24, 16  ;;  %v467_v30 = vand.u32 65535, %v466_v24 }
 0x1a1   : > { %v470_v26 = vcvt.s32.f32 %v468_v25  ;;  %v469_v33 = vcvt.s32.f32 %v467_v30 }
 0x1a3   : > { %471 = vmin.xlane.f32.xlu1 %v470_v26 }
 0x22c   : > { %v457_v28 = vpop.xlane.xlu1 %456 }
 0x22d   : > { %vm458_vm5 = vcmp.eq.f32.partialorder %v455_v23, %v457_v28  ;;  %v463_v36 = vcvt.f32.s32 %v457_v28 }
 0x22e   : > { %v459_v31 = vsel %vm458_vm5, %v454_v29, inf }
 0x22f   : > { %460 = vmin.xlane.f32.xlu0 %v459_v31  ;;  %v464_v38 = vshll.u32 %v463_v36, 16  ;;  %v1208_v36 = vld [vmem:[%s3080_s5 + $0x8] sm:$0xff] }
 0x230   : > { %v472_v32 = vpop.xlane.xlu1 %471 }
 0x231   : > { %vm473_vm6 = vcmp.eq.f32.partialorder %v470_v26, %v472_v32  ;;  %v478_v39 = vcvt.f32.s32 %v472_v32 }
 0x232   : > { %v474_v34 = vsel %vm473_vm6, %v469_v33, inf  ;;  %v2035_v33 = vpop.f32.mrb[0].mxu1 }
 0x233   : > { %475 = vmin.xlane.f32.xlu1 %v474_v34  ;;  %v479_v43 = vshll.u32 %v478_v39, 16  ;;  %v933_v34 = vpop.f32.mrb[1].mxu1  ;;  %v1210_v39 = vld [vmem:[%s3080_s5 + $0x18] sm:$0xff] }
 0x2bc   : > { %v461_v37 = vpop.xlane.xlu0 %460 }
 0x2bd   : > { %v462_v40 = vcvt.f32.s32 %v461_v37  ;;  %v2092_v37 = vpack.c.bf16 %v1208_v36, %v1207_v35 }
 0x2bf   : > { %v465_v41 = vadd.s32 %v464_v38, %v462_v40  ;;  %2093 = vmatprep.subr.bf16.mxu0 %v2092_v37  ;;  %v1209_v38 = vld [vmem:[%s3080_s5 + $0x10] sm:$0xff] }
 0x2c0   : > { %v476_v42 = vpop.xlane.xlu1 %475  ;;  %2095 = vmatpush3.bf16.msra.mxu0 %v2092_v37  ;;  %v2096_v40 = vpack.c.bf16 %v1210_v39, %v1209_v38 }
 0x2c1   : > { %vm481_vm8 = vcmp.eq.s32.totalorder %v2534_v16, %v465_v41  ;;  %v477_v44 = vcvt.f32.s32 %v476_v42 }
 0x2c2   : > { %v483_v45 = vsel %vm481_vm8, inf, %v439_v11  ;;  %v487_v48 = vsel %vm481_vm8, 1.0, %v2410_v47  ;;  %v2165_v11 = vld [vmem:[%s323_s13] sm:$0xff]   ;;  %2097 = vmatprep.subr.bf16.mxu0 %v2096_v40  ;;  %s1987_s13 = sshll.u32 %s2400_s29, 8  ;;  %s3029_s29 = scalar_lea.sflag [#allocation6], %s311_s6 }
 0x2c3   : > { %485 = vst.msk [vmem:[#allocation2] sm:$0xff] %vm434_vm2, %v483_v45  ;;  %v480_v46 = vadd.s32 %v479_v43, %v477_v44  ;;  %2036 = vmatprep.subr.bf16.mxu1 %v2165_v11  ;;  %s3021_s19 = scalar_lea.hbm %s3082_s7, %s1987_s13 }
 0x2c4   : > { %2037 = vmatpush3.bf16.msra.mxu1 %v2165_v11  ;;  %2099 = vmatpush3.bf16.msra.mxu0 %v2096_v40 }
 0x2c5   : > { %vm482_vm9 = vcmp.eq.s32.totalorder %v2534_v16, %v480_v46  ;;  %2100 = vmatprep.subr.bf16.mxu1 %v2092_v37 }
 0x2c6   : > { %v484_v49 = vsel %vm482_vm9, inf, %v440_v13  ;;  %v488_v50 = vsel %vm482_vm9, 1.0, %v2410_v47 }
 0x2c7   : > { %486 = vst.msk [vmem:[#allocation2 + $0x8] sm:$0xff] %vm434_vm2, %v484_v49  ;;  %v489_v51 = vpack.c.bf16 %v488_v50, %v487_v48 }
 0x2c9   : > { %490 = vst.msk [vmem:[#allocation3] sm:$0xff] %vm434_vm2, %v489_v51 }
 0x2ca   : > { %v491_v52 = vld [vmem:[#allocation2] sm:$0xff] }
 0x2cb   : > { %v493_v53 = vsel %vm434_vm2, %v491_v52, inf }
 0x2cc   : > { %494 = vmin.xlane.f32.xlu0 %v493_v53 }
 0x2ce   : > { %v492_v54 = vld [vmem:[#allocation2 + $0x8] sm:$0xff] }
 0x2cf   : > { %v496_v55 = vsel %vm434_vm2, %v492_v54, inf }
 0x2d0   : > { %497 = vmin.xlane.f32.xlu1 %v496_v55  ;;  %v942_v56 = vld [vmem:[#allocation3] sm:$0xff] }
 0x2d1   : > { %2038 = vmatprep.mubr.msk.bf16.mxu1 %vm434_vm2, %v942_v56 }
 0x359   : > { %v495_v57 = vpop.xlane.xlu0 %494 }
 0x35a   : > { %vm499_vm10 = vcmp.le.f32.partialorder %v491_v52, %v495_v57 }
 0x35b   : > { %v501_v58 = vsel %vm499_vm10, %v2534_v16, 16 }
 0x35c   : > { %v503_v59 = vsel %vm434_vm2, %v501_v58, 2147483647 }
 0x35d   : > { %v498_v60 = vpop.xlane.xlu1 %497  ;;  %v505_v61 = vshra.s32 %v503_v59, 16  ;;  %v504_v3 = vand.u32 65535, %v503_v59 }
 0x35e   : > { %vm500_vm11 = vcmp.le.f32.partialorder %v492_v54, %v498_v60 }
 0x35f   : > { %v502_v62 = vsel %vm500_vm11, %v2534_v16, 16  ;;  %v507_v63 = vcvt.s32.f32 %v505_v61  ;;  %v506_v5 = vcvt.s32.f32 %v504_v3 }
 0x360   : > { %v518_v0 = vsel %vm434_vm2, %v502_v62, 2147483647 }
 0x361   : > { %508 = vmin.xlane.f32.xlu0 %v507_v63  ;;  %v520_v1 = vshra.s32 %v518_v0, 16  ;;  %v519_v6 = vand.u32 65535, %v518_v0 }
 0x363   : > { %v522_v2 = vcvt.s32.f32 %v520_v1  ;;  %v521_v9 = vcvt.s32.f32 %v519_v6 }
 0x365   : > { %523 = vmin.xlane.f32.xlu1 %v522_v2 }
 0x3ee   : > { %v509_v4 = vpop.xlane.xlu0 %508 }
 0x3ef   : > { %vm510_vm12 = vcmp.eq.f32.partialorder %v507_v63, %v509_v4  ;;  %v515_v12 = vcvt.f32.s32 %v509_v4 }
 0x3f0   : > { %v511_v7 = vsel %vm510_vm12, %v506_v5, inf }
 0x3f1   : > { %512 = vmin.xlane.f32.xlu0 %v511_v7  ;;  %v516_v14 = vshll.u32 %v515_v12, 16 }
 0x3f2   : > { %v524_v8 = vpop.xlane.xlu1 %523 }
 0x3f3   : > { %vm525_vm13 = vcmp.eq.f32.partialorder %v522_v2, %v524_v8  ;;  %v530_v15 = vcvt.f32.s32 %v524_v8 }
 0x3f4   : > { %v526_v10 = vsel %vm525_vm13, %v521_v9, inf }
 0x3f5   : > { %527 = vmin.xlane.f32.xlu1 %v526_v10  ;;  %v531_v20 = vshll.u32 %v530_v15, 16 }
 0x47e   : > { %v513_v13 = vpop.xlane.xlu0 %512 }
 0x47f   : > { %v514_v17 = vcvt.f32.s32 %v513_v13 }
 0x481   : > { %v517_v18 = vadd.s32 %v516_v14, %v514_v17 }
 0x482   : > { %v528_v19 = vpop.xlane.xlu1 %527 }
 0x483   : > { %vm533_vm14 = vcmp.eq.s32.totalorder %v2534_v16, %v517_v18  ;;  %v529_v21 = vcvt.f32.s32 %v528_v19 }
 0x484   : > { %v535_v22 = vsel %vm533_vm14, inf, %v491_v52  ;;  %v539_v24 = vsel %vm533_vm14, 1.0, %v2410_v47  ;;  %v1918_v52 = vld [vmem:[%s3079_s4] ss:$0 sm:$0xff] }
 0x485   : > { %537 = vst.msk [vmem:[#allocation2] sm:$0xff] %vm434_vm2, %v535_v22  ;;  %v532_v23 = vadd.s32 %v531_v20, %v529_v21  ;;  %v2599_v53 = vadd.f32 %v1918_v52, %v933_v34 }
 0x487   : > { %vm534_vm15 = vcmp.eq.s32.totalorder %v2534_v16, %v532_v23 }
 0x488   : > { %v536_v25 = vsel %vm534_vm15, inf, %v492_v54  ;;  %v540_v26 = vsel %vm534_vm15, 1.0, %v2410_v47  ;;  %v2601_v54 = vadd.f32 %v2035_v33, %v1918_v52 }
 0x489   : > { %538 = vst.msk [vmem:[#allocation2 + $0x8] sm:$0xff] %vm434_vm2, %v536_v25  ;;  %v541_v27 = vpack.c.bf16 %v540_v26, %v539_v24 }
 0x48b   : > { %542 = vst.msk [vmem:[#allocation3 + $0x8] sm:$0xff] %vm434_vm2, %v541_v27 }
 0x48c   : > { %v2569_v28 = vld [vmem:[#allocation2] sm:$0xff] }
 0x48d   : > { %v545_v29 = vsel %vm434_vm2, %v2569_v28, inf }
 0x48e   : > { %546 = vmin.xlane.f32.xlu0 %v545_v29 }
 0x490   : > { %v2573_v30 = vld [vmem:[#allocation2 + $0x8] sm:$0xff] }
 0x491   : > { %v548_v31 = vsel %vm434_vm2, %v2573_v30, inf }
 0x492   : > { %549 = vmin.xlane.f32.xlu1 %v548_v31  ;;  %v943_v32 = vld [vmem:[#allocation3 + $0x8] sm:$0xff] }
 0x493   : > { %2039 = vmatmul.mubr.msk.bf16.vlgmr.msra.gmra.mrb[4].mxu1 %vm434_vm2, %v943_v32 }
 0x494   : > { %2102 = vmatpush3.bf16.msra.mxu1 %v2092_v37 }
 0x495   : > { %2101 = vmatprep.subr.bf16.mxu1 %v2096_v40 }
 0x498   : > { %2103 = vmatpush3.bf16.msra.mxu1 %v2096_v40 }
 0x51b   : > { %v547_v41 = vpop.xlane.xlu0 %546 }
 0x51c   : > { %vm551_vm0 = vcmp.le.f32.partialorder %v2569_v28, %v547_v41 }
 0x51d   : > { %v553_v42 = vsel %vm551_vm0, %v2534_v16, 16 }
 0x51e   : > { %v555_v43 = vsel %vm434_vm2, %v553_v42, 2147483647 }
 0x51f   : > { %v550_v44 = vpop.xlane.xlu1 %549  ;;  %v557_v45 = vshra.s32 %v555_v43, 16  ;;  %v556_v20 = vand.u32 65535, %v555_v43 }
 0x520   : > { %vm552_vm1 = vcmp.le.f32.partialorder %v2573_v30, %v550_v44 }
 0x521   : > { %v554_v46 = vsel %vm552_vm1, %v2534_v16, 16  ;;  %v559_v48 = vcvt.s32.f32 %v557_v45  ;;  %v558_v22 = vcvt.s32.f32 %v556_v20 }
 0x522   : > { %v570_v49 = vsel %vm434_vm2, %v554_v46, 2147483647 }
 0x523   : > { %560 = vmin.xlane.f32.xlu0 %v559_v48  ;;  %v572_v50 = vshra.s32 %v570_v49, 16  ;;  %v571_v23 = vand.u32 65535, %v570_v49 }
 0x525   : > { %v574_v51 = vcvt.s32.f32 %v572_v50  ;;  %v573_v26 = vcvt.s32.f32 %v571_v23 }
 0x527   : > { %575 = vmin.xlane.f32.xlu1 %v574_v51 }
 0x566   : > { %v2040_v55 = vpop.f32.mrb[4].mxu1 }
 0x567   : > { %v1081_v56 = vadd.f32 %v2040_v55, %v2599_v53  ;;  %v1016_v57 = vpop.f32.mrb[5].mxu1 }
 0x568   : > { %v1079_v58 = vadd.f32 %v1016_v57, %v2599_v53  ;;  %v2041_v59 = vpop.f32.mrb[6].mxu1 }
 0x569   : > { %v1933_v60 = vmul.f32 -1.442695, %v1081_v56  ;;  %v1082_v61 = vadd.f32 %v2041_v59, %v2601_v54  ;;  %v1019_v62 = vpop.f32.mrb[7].mxu1 }
 0x56a   : > { %v1931_v63 = vmul.f32 -1.442695, %v1079_v58  ;;  %v1080_v0 = vadd.f32 %v1019_v62, %v2601_v54 }
 0x56b   : > { %2166 = vpow2.f32 %v1933_v60  ;;  %v1934_v1 = vmul.f32 -1.442695, %v1082_v61 }
 0x56c   : > { %2168 = vpow2.f32 %v1931_v63  ;;  %v1932_v2 = vmul.f32 -1.442695, %v1080_v0 }
 0x56d   : > { %2170 = vpow2.f32 %v1934_v1 }
 0x56e   : > { %2172 = vpow2.f32 %v1932_v2 }
 0x575   : > { %v2167_v3 = vpop.eup %2166 }
 0x576   : > { %v2169_v4 = vpop.eup %2168  ;;  %v1145_v5 = vadd.f32 1.0, %v2167_v3 }
 0x577   : > { %v2171_v6 = vpop.eup %2170  ;;  %v1143_v7 = vadd.f32 1.0, %v2169_v4 }
 0x578   : > { %v2173_v8 = vpop.eup %2172  ;;  %v1146_v9 = vadd.f32 1.0, %v2171_v6 }
 0x579   : > { %2174 = vrcp.f32 %v1143_v7  ;;  %v1144_v10 = vadd.f32 1.0, %v2173_v8 }
 0x57a   : > { %2176 = vrcp.f32 %v1145_v5 }
 0x57b   : > { %2178 = vrcp.f32 %v1144_v10 }
 0x57c   : > { %2180 = vrcp.f32 %v1146_v9 }
 0x583   : > { %v2175_v11 = vpop.eup %2174 }
 0x584   : > { %v2177_v12 = vpop.eup %2176  ;;  %v2607_v13 = vmul.f32 %v2175_v11, %v1079_v58 }
 0x585   : > { %v2179_v14 = vpop.eup %2178  ;;  %v2613_v18 = vmul.f32 %v2177_v12, %v1081_v56 }
 0x586   : > { %v2609_v15 = vmul.f32 %v2179_v14, %v1080_v0  ;;  %2062 = vmatprep.mubr.msk.f32.mxu0 %vm1211_vm3, %v2607_v13  ;;  %v2181_v17 = vpop.eup %2180 }
 0x587   : > { %v2619_v19 = vmul.f32 %v2181_v17, %v1082_v61 }
 0x588   : > { %2063 = vmatmul.mubr.msk.f32.vlgmr.msra.gmra.mrb[2].mxu0 %vm1211_vm3, %v2609_v15 }
 0x589   : > { %2065 = vmatprep.mubr.msk.f32.mxu0 %vm1211_vm3, %v2613_v18 }
 0x58c   : > { %2066 = vmatmul.mubr.msk.f32.gmra.mrb[4].mxu0 %vm1211_vm3, %v2619_v19 }
 0x5b0   : > { %v561_v21 = vpop.xlane.xlu0 %560 }
 0x5b1   : > { %vm562_vm4 = vcmp.eq.f32.partialorder %v559_v48, %v561_v21  ;;  %v567_v29 = vcvt.f32.s32 %v561_v21 }
 0x5b2   : > { %v563_v24 = vsel %vm562_vm4, %v558_v22, inf }
 0x5b3   : > { %564 = vmin.xlane.f32.xlu0 %v563_v24  ;;  %v568_v32 = vshll.u32 %v567_v29, 16 }
 0x5b4   : > { %v576_v25 = vpop.xlane.xlu1 %575 }
 0x5b5   : > { %vm577_vm5 = vcmp.eq.f32.partialorder %v574_v51, %v576_v25  ;;  %v582_v33 = vcvt.f32.s32 %v576_v25 }
 0x5b6   : > { %v578_v27 = vsel %vm577_vm5, %v573_v26, inf }
 0x5b7   : > { %579 = vmin.xlane.f32.xlu1 %v578_v27  ;;  %v583_v37 = vshll.u32 %v582_v33, 16 }
 0x640   : > { %v565_v31 = vpop.xlane.xlu0 %564 }
 0x641   : > { %v566_v34 = vcvt.f32.s32 %v565_v31 }
 0x643   : > { %v569_v35 = vadd.s32 %v568_v32, %v566_v34 }
 0x644   : > { %v580_v36 = vpop.xlane.xlu1 %579 }
 0x645   : > { %vm585_vm6 = vcmp.eq.s32.totalorder %v2534_v16, %v569_v35  ;;  %v581_v38 = vcvt.f32.s32 %v580_v36 }
 0x646   : > { %v587_v39 = vsel %vm585_vm6, inf, %v2569_v28  ;;  %v591_v41 = vsel %vm585_vm6, 1.0, %v2410_v47  ;;  %vm1540_vm6 = vcmask 7168  }
 0x647   : > { %589 = vst.msk [vmem:[#allocation2] sm:$0xff] %vm434_vm2, %v587_v39  ;;  %v584_v40 = vadd.s32 %v583_v37, %v581_v38 }
 0x649   : > { %vm586_vm7 = vcmp.eq.s32.totalorder %v2534_v16, %v584_v40 }
 0x64a   : > { %v588_v42 = vsel %vm586_vm7, inf, %v2573_v30  ;;  %v592_v43 = vsel %vm586_vm7, 1.0, %v2410_v47 }
 0x64b   : > { %590 = vst.msk [vmem:[#allocation2 + $0x8] sm:$0xff] %vm434_vm2, %v588_v42  ;;  %v593_v44 = vpack.c.bf16 %v592_v43, %v591_v41 }
 0x64d   : > { %594 = vst.msk [vmem:[#allocation3 + $0x10] sm:$0xff] %vm434_vm2, %v593_v44 }
 0x64e   : > { %v595_v45 = vld [vmem:[#allocation2] sm:$0xff] }
 0x64f   : > { %v597_v46 = vsel %vm434_vm2, %v595_v45, inf }
 0x650   : > { %598 = vmin.xlane.f32.xlu0 %v597_v46 }
 0x652   : > { %v596_v28 = vld [vmem:[#allocation2 + $0x8] sm:$0xff] }
 0x653   : > { %v600_v48 = vsel %vm434_vm2, %v596_v28, inf }
 0x654   : > { %601 = vmin.xlane.f32.xlu1 %v600_v48  ;;  %v944_v49 = vld [vmem:[#allocation3 + $0x10] sm:$0xff] }
 0x655   : > { %2042 = vmatprep.mubr.msk.bf16.mxu1 %vm434_vm2, %v944_v49 }
 0x65b   : > { %v2635_v50 = vpop.f32.mrb[2].mxu0 }
 0x65c   : > { %v2637_v30 = vpop.f32.mrb[3].mxu0 }
 0x65f   : > { %v2639_v51 = vpop.f32.mrb[4].mxu0 }
 0x660   : > { %v2641_v52 = vpop.f32.mrb[5].mxu0 }
 0x6dd   : > { %v599_v55 = vpop.xlane.xlu0 %598 }
 0x6de   : > { %vm603_vm8 = vcmp.le.f32.partialorder %v595_v45, %v599_v55 }
 0x6df   : > { %v605_v56 = vsel %vm603_vm8, %v2534_v16, 16 }
 0x6e0   : > { %v607_v57 = vsel %vm434_vm2, %v605_v56, 2147483647 }
 0x6e1   : > { %v602_v58 = vpop.xlane.xlu1 %601  ;;  %v609_v59 = vshra.s32 %v607_v57, 16  ;;  %v608_v1 = vand.u32 65535, %v607_v57 }
 0x6e2   : > { %vm604_vm9 = vcmp.le.f32.partialorder %v596_v28, %v602_v58 }
 0x6e3   : > { %v606_v60 = vsel %vm604_vm9, %v2534_v16, 16  ;;  %v611_v61 = vcvt.s32.f32 %v609_v59  ;;  %v610_v3 = vcvt.s32.f32 %v608_v1 }
 0x6e4   : > { %v622_v62 = vsel %vm434_vm2, %v606_v60, 2147483647 }
 0x6e5   : > { %612 = vmin.xlane.f32.xlu0 %v611_v61  ;;  %v624_v63 = vshra.s32 %v622_v62, 16  ;;  %v623_v4 = vand.u32 65535, %v622_v62 }
 0x6e7   : > { %v626_v0 = vcvt.s32.f32 %v624_v63  ;;  %v625_v7 = vcvt.s32.f32 %v623_v4 }
 0x6e9   : > { %627 = vmin.xlane.f32.xlu1 %v626_v0 }
 0x772   : > { %v613_v2 = vpop.xlane.xlu0 %612 }
 0x773   : > { %vm614_vm10 = vcmp.eq.f32.partialorder %v611_v61, %v613_v2  ;;  %v619_v9 = vcvt.f32.s32 %v613_v2 }
 0x774   : > { %v615_v5 = vsel %vm614_vm10, %v610_v3, inf }
 0x775   : > { %616 = vmin.xlane.f32.xlu0 %v615_v5  ;;  %v620_v11 = vshll.u32 %v619_v9, 16 }
 0x776   : > { %v628_v6 = vpop.xlane.xlu1 %627 }
 0x777   : > { %vm629_vm11 = vcmp.eq.f32.partialorder %v626_v0, %v628_v6  ;;  %v634_v12 = vcvt.f32.s32 %v628_v6 }
 0x778   : > { %v630_v8 = vsel %vm629_vm11, %v625_v7, inf }
 0x779   : > { %631 = vmin.xlane.f32.xlu1 %v630_v8  ;;  %v635_v21 = vshll.u32 %v634_v12, 16 }
 0x802   : > { %v617_v10 = vpop.xlane.xlu0 %616 }
 0x803   : > { %v618_v14 = vcvt.f32.s32 %v617_v10 }
 0x805   : > { %v621_v17 = vadd.s32 %v620_v11, %v618_v14 }
 0x806   : > { %v632_v20 = vpop.xlane.xlu1 %631 }
 0x807   : > { %vm637_vm12 = vcmp.eq.s32.totalorder %v2534_v16, %v621_v17  ;;  %v633_v22 = vcvt.f32.s32 %v632_v20 }
 0x808   : > { %v639_v23 = vsel %vm637_vm12, inf, %v595_v45  ;;  %v643_v25 = vsel %vm637_vm12, 1.0, %v2410_v47 }
 0x809   : > { %641 = vst.msk [vmem:[#allocation2] sm:$0xff] %vm434_vm2, %v639_v23  ;;  %v636_v24 = vadd.s32 %v635_v21, %v633_v22 }
 0x80b   : > { %vm638_vm13 = vcmp.eq.s32.totalorder %v2534_v16, %v636_v24 }
 0x80c   : > { %v640_v26 = vsel %vm638_vm13, inf, %v596_v28  ;;  %v644_v27 = vsel %vm638_vm13, 1.0, %v2410_v47 }
 0x80d   : > { %642 = vst.msk [vmem:[#allocation2 + $0x8] sm:$0xff] %vm434_vm2, %v640_v26  ;;  %v645_v29 = vpack.c.bf16 %v644_v27, %v643_v25 }
 0x80f   : > { %646 = vst.msk [vmem:[#allocation3 + $0x18] sm:$0xff] %vm434_vm2, %v645_v29 }
 0x810   : > { %v2654_v31 = vld [vmem:[#allocation2] sm:$0xff] }
 0x811   : > { %v649_v32 = vsel %vm434_vm2, %v2654_v31, inf }
 0x812   : > { %650 = vmin.xlane.f32.xlu0 %v649_v32 }
 0x814   : > { %v2658_v33 = vld [vmem:[#allocation2 + $0x8] sm:$0xff] }
 0x815   : > { %v652_v34 = vsel %vm434_vm2, %v2658_v33, inf }
 0x816   : > { %653 = vmin.xlane.f32.xlu1 %v652_v34  ;;  %v945_v35 = vld [vmem:[#allocation3 + $0x18] sm:$0xff] }
 0x817   : > { %2043 = vmatmul.mubr.msk.bf16.gmra.mrb[8].mxu1 %vm434_vm2, %v945_v35 }
 0x89f   : > { %v651_v36 = vpop.xlane.xlu0 %650 }
 0x8a0   : > { %vm655_vm14 = vcmp.le.f32.partialorder %v2654_v31, %v651_v36 }
 0x8a1   : > { %v657_v37 = vsel %vm655_vm14, %v2534_v16, 16 }
 0x8a2   : > { %v659_v38 = vsel %vm434_vm2, %v657_v37, 2147483647 }
 0x8a3   : > { %v654_v39 = vpop.xlane.xlu1 %653  ;;  %v661_v40 = vshra.s32 %v659_v38, 16  ;;  %v660_v20 = vand.u32 65535, %v659_v38 }
 0x8a4   : > { %vm656_vm15 = vcmp.le.f32.partialorder %v2658_v33, %v654_v39 }
 0x8a5   : > { %v658_v41 = vsel %vm656_vm15, %v2534_v16, 16  ;;  %v663_v42 = vcvt.s32.f32 %v661_v40  ;;  %v662_v22 = vcvt.s32.f32 %v660_v20 }
 0x8a6   : > { %v674_v43 = vsel %vm434_vm2, %v658_v41, 2147483647 }
 0x8a7   : > { %664 = vmin.xlane.f32.xlu0 %v663_v42  ;;  %v676_v44 = vshra.s32 %v674_v43, 16  ;;  %v675_v23 = vand.u32 65535, %v674_v43 }
 0x8a9   : > { %v678_v45 = vcvt.s32.f32 %v676_v44  ;;  %v677_v26 = vcvt.s32.f32 %v675_v23 }
 0x8ab   : > { %679 = vmin.xlane.f32.xlu1 %v678_v45 }
 0x8ea   : > { %v2044_v46 = vpop.f32.mrb[8].mxu1 }
 0x8eb   : > { %v1085_v28 = vadd.f32 %v2044_v46, %v2599_v53  ;;  %v1032_v48 = vpop.f32.mrb[9].mxu1 }
 0x8ec   : > { %v1083_v49 = vadd.f32 %v1032_v48, %v2599_v53  ;;  %v2045_v55 = vpop.f32.mrb[10].mxu1 }
 0x8ed   : > { %v1937_v56 = vmul.f32 -1.442695, %v1085_v28  ;;  %v1086_v57 = vadd.f32 %v2045_v55, %v2601_v54  ;;  %v1035_v58 = vpop.f32.mrb[11].mxu1 }
 0x8ee   : > { %v1935_v59 = vmul.f32 -1.442695, %v1083_v49  ;;  %v1084_v60 = vadd.f32 %v1035_v58, %v2601_v54 }
 0x8ef   : > { %2182 = vpow2.f32 %v1937_v56  ;;  %v1938_v61 = vmul.f32 -1.442695, %v1086_v57 }
 0x8f0   : > { %2184 = vpow2.f32 %v1935_v59  ;;  %v1936_v62 = vmul.f32 -1.442695, %v1084_v60 }
 0x8f1   : > { %2186 = vpow2.f32 %v1938_v61 }
 0x8f2   : > { %2188 = vpow2.f32 %v1936_v62 }
 0x8f9   : > { %v2183_v63 = vpop.eup %2182 }
 0x8fa   : > { %v2185_v0 = vpop.eup %2184  ;;  %v1149_v1 = vadd.f32 1.0, %v2183_v63 }
 0x8fb   : > { %v2187_v2 = vpop.eup %2186  ;;  %v1147_v3 = vadd.f32 1.0, %v2185_v0 }
 0x8fc   : > { %v2189_v4 = vpop.eup %2188  ;;  %v1150_v5 = vadd.f32 1.0, %v2187_v2 }
 0x8fd   : > { %2190 = vrcp.f32 %v1147_v3  ;;  %v1148_v6 = vadd.f32 1.0, %v2189_v4 }
 0x8fe   : > { %2192 = vrcp.f32 %v1149_v1 }
 0x8ff   : > { %2194 = vrcp.f32 %v1148_v6 }
 0x900   : > { %2196 = vrcp.f32 %v1150_v5 }
 0x907   : > { %v2191_v7 = vpop.eup %2190 }
 0x908   : > { %v2193_v8 = vpop.eup %2192  ;;  %v2673_v9 = vmul.f32 %v2191_v7, %v1083_v49 }
 0x909   : > { %v2195_v10 = vpop.eup %2194  ;;  %v2679_v14 = vmul.f32 %v2193_v8, %v1085_v28  ;;  %v2697_v28 = vld [vmem:[#allocation4] ss:$0 sm:$0xff] }
 0x90a   : > { %v2675_v11 = vmul.f32 %v2195_v10, %v1084_v60  ;;  %2068 = vmatprep.mubr.msk.f32.mxu0 %vm1211_vm3, %v2673_v9  ;;  %v2197_v12 = vpop.eup %2196  ;;  %v1413_v49 = vadd.f32 %v2635_v50, %v2697_v28  ;;  %v2712_v55 = vadd.f32 %v2639_v51, %v2697_v28 }
 0x90b   : > { %v2685_v17 = vmul.f32 %v2197_v12, %v1086_v57  ;;  %v2718_v57 = vadd.f32 %v2697_v28, %v2641_v52 }
 0x90c   : > { %2069 = vmatmul.mubr.msk.f32.gmra.mrb[6].mxu0 %vm1211_vm3, %v2675_v11  ;;  %v1965_v59 = vmul.f32 -1.442695, %v1413_v49 }
 0x90d   : > { %2071 = vmatprep.mubr.msk.f32.mxu0 %vm1211_vm3, %v2679_v14  ;;  %v1966_v51 = vmul.f32 -1.442695, %v2718_v57 }
 0x90e   : > { %2198 = vpow2.f32 %v1965_v59 }
 0x910   : > { %2072 = vmatmul.mubr.msk.f32.gmra.mrb[8].mxu0 %vm1211_vm3, %v2685_v17 }
 0x918   : > { %v2199_v6 = vpop.eup %2198 }
 0x934   : > { %v665_v21 = vpop.xlane.xlu0 %664 }
 0x935   : > { %vm666_vm0 = vcmp.eq.f32.partialorder %v663_v42, %v665_v21  ;;  %v671_v29 = vcvt.f32.s32 %v665_v21  ;;  %v1477_v21 = vadd.f32 1.0, %v2199_v6 }
 0x936   : > { %v667_v24 = vsel %vm666_vm0, %v662_v22, inf }
 0x937   : > { %668 = vmin.xlane.f32.xlu0 %v667_v24  ;;  %v672_v34 = vshll.u32 %v671_v29, 16 }
 0x938   : > { %v680_v25 = vpop.xlane.xlu1 %679 }
 0x939   : > { %vm681_vm1 = vcmp.eq.f32.partialorder %v678_v45, %v680_v25  ;;  %v686_v35 = vcvt.f32.s32 %v680_v25 }
 0x93a   : > { %v682_v27 = vsel %vm681_vm1, %v677_v26, inf }
 0x93b   : > { %683 = vmin.xlane.f32.xlu1 %v682_v27  ;;  %v687_v40 = vshll.u32 %v686_v35, 16 }
 0x9c4   : > { %v669_v32 = vpop.xlane.xlu0 %668 }
 0x9c5   : > { %v670_v36 = vcvt.f32.s32 %v669_v32 }
 0x9c7   : > { %v673_v37 = vadd.s32 %v672_v34, %v670_v36 }
 0x9c8   : > { %v684_v39 = vpop.xlane.xlu1 %683 }
 0x9c9   : > { %vm689_vm4 = vcmp.eq.s32.totalorder %v2534_v16, %v673_v37  ;;  %v685_v38 = vcvt.f32.s32 %v684_v39 }
 0x9ca   : > { %v691_v41 = vsel %vm689_vm4, inf, %v2654_v31  ;;  %v695_v43 = vsel %vm689_vm4, 1.0, %v2410_v47 }
 0x9cb   : > { %693 = vst.msk [vmem:[#allocation2] sm:$0xff] %vm434_vm2, %v691_v41  ;;  %v688_v42 = vadd.s32 %v687_v40, %v685_v38 }
 0x9cd   : > { %vm690_vm5 = vcmp.eq.s32.totalorder %v2534_v16, %v688_v42 }
 0x9ce   : > { %v692_v44 = vsel %vm690_vm5, inf, %v2658_v33  ;;  %v696_v45 = vsel %vm690_vm5, 1.0, %v2410_v47  ;;  %v2708_v33 = vadd.f32 %v2697_v28, %v2637_v30  ;;  %v1967_v30 = vmul.f32 -1.442695, %v2712_v55 }
 0x9cf   : > { %694 = vst.msk [vmem:[#allocation2 + $0x8] sm:$0xff] %vm434_vm2, %v692_v44  ;;  %v697_v46 = vpack.c.bf16 %v696_v45, %v695_v43 }
 0x9d0   : > { %v1964_v60 = vmul.f32 -1.442695, %v2708_v33 }
 0x9d1   : > { %698 = vst.msk [vmem:[#allocation3 + $0x20] sm:$0xff] %vm434_vm2, %v697_v46 }
 0x9d2   : > { %v2700_v48 = vld [vmem:[#allocation2] sm:$0xff]  ;;  %2200 = vpow2.f32 %v1964_v60 }
 0x9d3   : > { %v701_v31 = vsel %vm434_vm2, %v2700_v48, inf  ;;  %2202 = vpow2.f32 %v1967_v30 }
 0x9d4   : > { %702 = vmin.xlane.f32.xlu0 %v701_v31  ;;  %2204 = vpow2.f32 %v1966_v51 }
 0x9d6   : > { %v2714_v56 = vld [vmem:[#allocation2 + $0x8] sm:$0xff] }
 0x9d7   : > { %v704_v58 = vsel %vm434_vm2, %v2714_v56, inf }
 0x9d8   : > { %705 = vmin.xlane.f32.xlu1 %v704_v58  ;;  %v946_v50 = vld [vmem:[#allocation3 + $0x20] sm:$0xff] }
 0x9d9   : > { %2046 = vmatprep.mubr.msk.bf16.mxu1 %vm434_vm2, %v946_v50 }
 0x9dc   : > { %v2201_v8 = vpop.eup %2200 }
 0x9dd   : > { %v2203_v12 = vpop.eup %2202  ;;  %v1476_v22 = vadd.f32 1.0, %v2201_v8 }
 0x9de   : > { %v2205_v20 = vpop.eup %2204  ;;  %v1479_v23 = vadd.f32 1.0, %v2203_v12 }
 0x9df   : > { %v2070_v52 = vpop.f32.mrb[6].mxu0  ;;  %v1478_v24 = vadd.f32 1.0, %v2205_v20 }
 0x9e0   : > { %v1417_v61 = vadd.f32 %v2070_v52, %v2697_v28  ;;  %v1346_v62 = vpop.f32.mrb[7].mxu0 }
 0x9e1   : > { %v1416_v63 = vadd.f32 %v2697_v28, %v1346_v62 }
 0x9e2   : > { %v1969_v0 = vmul.f32 -1.442695, %v1417_v61 }
 0x9e3   : > { %v1968_v1 = vmul.f32 -1.442695, %v1416_v63  ;;  %v2073_v2 = vpop.f32.mrb[8].mxu0 }
 0x9e4   : > { %2206 = vpow2.f32 %v1969_v0  ;;  %v1419_v3 = vadd.f32 %v2073_v2, %v2697_v28  ;;  %v1356_v4 = vpop.f32.mrb[9].mxu0 }
 0x9e5   : > { %2208 = vpow2.f32 %v1968_v1  ;;  %v1418_v5 = vadd.f32 %v2697_v28, %v1356_v4 }
 0x9e6   : > { %v1971_v7 = vmul.f32 -1.442695, %v1419_v3 }
 0x9e7   : > { %v1970_v10 = vmul.f32 -1.442695, %v1418_v5 }
 0x9e8   : > { %2210 = vpow2.f32 %v1971_v7 }
 0x9e9   : > { %2212 = vpow2.f32 %v1970_v10 }
 0x9ea   : > { %2214 = vrcp.f32 %v1477_v21 }
 0x9eb   : > { %2216 = vrcp.f32 %v1476_v22 }
 0x9ec   : > { %2218 = vrcp.f32 %v1479_v23 }
 0x9ed   : > { %2220 = vrcp.f32 %v1478_v24 }
 0x9ee   : > { %v2207_v25 = vpop.eup %2206 }
 0x9ef   : > { %v2209_v26 = vpop.eup %2208  ;;  %v1481_v27 = vadd.f32 1.0, %v2207_v25 }
 0x9f0   : > { %v1480_v29 = vadd.f32 1.0, %v2209_v26 }
 0x9f1   : > { %2222 = vrcp.f32 %v1481_v27 }
 0x9f2   : > { %v2211_v32 = vpop.eup %2210  ;;  %2224 = vrcp.f32 %v1480_v29 }
 0x9f3   : > { %v2213_v34 = vpop.eup %2212  ;;  %v1483_v35 = vadd.f32 1.0, %v2211_v32 }
 0x9f4   : > { %v1482_v36 = vadd.f32 1.0, %v2213_v34  ;;  %v2215_v37 = vpop.eup %2214 }
 0x9f5   : > { %2226 = vrcp.f32 %v1483_v35  ;;  %v2217_v39 = vpop.eup %2216  ;;  %v2730_v41 = vmul.f32 %v2215_v37, %v1413_v49 }
 0x9f6   : > { %2228 = vrcp.f32 %v1482_v36  ;;  %v2219_v40 = vpop.eup %2218  ;;  %v2733_v43 = vmul.f32 %v2217_v39, %v2708_v33 }
 0x9f7   : > { %v2221_v38 = vpop.eup %2220  ;;  %v2741_v31 = vsel %vm1540_vm6, %v2730_v41, -inf  ;;  %v2744_v58 = vmul.f32 %v2219_v40, %v2712_v55 }
 0x9f8   : > { %v2752_v33 = vsel %vm1540_vm6, %v2733_v43, -inf  ;;  %v2755_v50 = vmul.f32 %v2221_v38, %v2718_v57 }
 0x9f9   : > { %v2771_v62 = vsel %vm1540_vm6, %v2744_v58, -inf }
 0x9fb   : > { %v2223_v42 = vpop.eup %2222 }
 0x9fc   : > { %v2225_v44 = vpop.eup %2224  ;;  %v2735_v45 = vmul.f32 %v2223_v42, %v1417_v61 }
 0x9fd   : > { %v2737_v46 = vmul.f32 %v2225_v44, %v1416_v63  ;;  %v2779_v63 = vsel %vm1540_vm6, %v2755_v50, -inf }
 0x9fe   : > { %v2748_v49 = vsel %vm1540_vm6, %v2735_v45, -inf }
 0x9ff   : > { %v2227_v59 = vpop.eup %2226  ;;  %v1559_v60 = vmax.f32 %v2741_v31, %v2748_v49  ;;  %v2761_v30 = vsel %vm1540_vm6, %v2737_v46, -inf }
 0xa00   : > { %v2229_v55 = vpop.eup %2228  ;;  %v1544_v51 = vmax.f32 %v2752_v33, %v2761_v30  ;;  %v2765_v52 = vmul.f32 %v2227_v59, %v1419_v3 }
 0xa01   : > { %v2767_v61 = vmul.f32 %v2229_v55, %v1418_v5 }
 0xa02   : > { %v2775_v57 = vsel %vm1540_vm6, %v2765_v52, -inf }
 0xa03   : > { %v1561_v0 = vmax.f32 %v2771_v62, %v2775_v57  ;;  %v2785_v1 = vsel %vm1540_vm6, %v2767_v61, -inf }
 0xa04   : > { %v1546_v2 = vmax.f32 %v2779_v63, %v2785_v1 }
 0xa61   : > { %v703_v3 = vpop.xlane.xlu0 %702 }
 0xa62   : > { %vm707_vm7 = vcmp.le.f32.partialorder %v2700_v48, %v703_v3 }
 0xa63   : > { %v709_v4 = vsel %vm707_vm7, %v2534_v16, 16 }
 0xa64   : > { %v711_v5 = vsel %vm434_vm2, %v709_v4, 2147483647 }
 0xa65   : > { %v706_v6 = vpop.xlane.xlu1 %705  ;;  %v713_v7 = vshra.s32 %v711_v5, 16  ;;  %v712_v22 = vand.u32 65535, %v711_v5 }
 0xa66   : > { %vm708_vm8 = vcmp.le.f32.partialorder %v2714_v56, %v706_v6 }
 0xa67   : > { %v710_v8 = vsel %vm708_vm8, %v2534_v16, 16  ;;  %v715_v10 = vcvt.s32.f32 %v713_v7  ;;  %v714_v24 = vcvt.s32.f32 %v712_v22 }
 0xa68   : > { %v726_v12 = vsel %vm434_vm2, %v710_v8, 2147483647 }
 0xa69   : > { %716 = vmin.xlane.f32.xlu0 %v715_v10  ;;  %v728_v20 = vshra.s32 %v726_v12, 16  ;;  %v727_v25 = vand.u32 65535, %v726_v12 }
 0xa6b   : > { %v730_v21 = vcvt.s32.f32 %v728_v20  ;;  %v729_v29 = vcvt.s32.f32 %v727_v25 }
 0xa6d   : > { %731 = vmin.xlane.f32.xlu1 %v730_v21 }
 0xaf6   : > { %v717_v23 = vpop.xlane.xlu0 %716 }
 0xaf7   : > { %vm718_vm9 = vcmp.eq.f32.partialorder %v715_v10, %v717_v23  ;;  %v723_v34 = vcvt.f32.s32 %v717_v23 }
 0xaf8   : > { %v719_v26 = vsel %vm718_vm9, %v714_v24, inf }
 0xaf9   : > { %720 = vmin.xlane.f32.xlu0 %v719_v26  ;;  %v724_v36 = vshll.u32 %v723_v34, 16 }
 0xafa   : > { %v732_v27 = vpop.xlane.xlu1 %731 }
 0xafb   : > { %vm733_vm10 = vcmp.eq.f32.partialorder %v730_v21, %v732_v27  ;;  %v738_v37 = vcvt.f32.s32 %v732_v27 }
 0xafc   : > { %v734_v32 = vsel %vm733_vm10, %v729_v29, inf }
 0xafd   : > { %735 = vmin.xlane.f32.xlu1 %v734_v32  ;;  %v739_v42 = vshll.u32 %v738_v37, 16 }
 0xb86   : > { %v721_v35 = vpop.xlane.xlu0 %720 }
 0xb87   : > { %v722_v39 = vcvt.f32.s32 %v721_v35 }
 0xb89   : > { %v725_v40 = vadd.s32 %v724_v36, %v722_v39 }
 0xb8a   : > { %v736_v38 = vpop.xlane.xlu1 %735 }
 0xb8b   : > { %vm741_vm11 = vcmp.eq.s32.totalorder %v2534_v16, %v725_v40  ;;  %v737_v44 = vcvt.f32.s32 %v736_v38 }
 0xb8c   : > { %v743_v59 = vsel %vm741_vm11, inf, %v2700_v48  ;;  %v747_v3 = vsel %vm741_vm11, 1.0, %v2410_v47 }
 0xb8d   : > { %745 = vst.msk [vmem:[#allocation2] sm:$0xff] %vm434_vm2, %v743_v59  ;;  %v740_v55 = vadd.s32 %v739_v42, %v737_v44 }
 0xb8f   : > { %vm742_vm12 = vcmp.eq.s32.totalorder %v2534_v16, %v740_v55 }
 0xb90   : > { %v744_v4 = vsel %vm742_vm12, inf, %v2714_v56  ;;  %v748_v5 = vsel %vm742_vm12, 1.0, %v2410_v47 }
 0xb91   : > { %746 = vst.msk [vmem:[#allocation2 + $0x8] sm:$0xff] %vm434_vm2, %v744_v4  ;;  %v749_v6 = vpack.c.bf16 %v748_v5, %v747_v3 }
 0xb93   : > { %750 = vst.msk [vmem:[#allocation3 + $0x28] sm:$0xff] %vm434_vm2, %v749_v6 }
 0xb94   : > { %v2804_v7 = vld [vmem:[#allocation2] sm:$0xff] }
 0xb95   : > { %v753_v48 = vsel %vm434_vm2, %v2804_v7, inf }
 0xb96   : > { %754 = vmin.xlane.f32.xlu0 %v753_v48 }
 0xb98   : > { %v2808_v8 = vld [vmem:[#allocation2 + $0x8] sm:$0xff] }
 0xb99   : > { %v756_v10 = vsel %vm434_vm2, %v2808_v8, inf }
 0xb9a   : > { %757 = vmin.xlane.f32.xlu1 %v756_v10  ;;  %v947_v56 = vld [vmem:[#allocation3 + $0x28] sm:$0xff] }
 0xb9b   : > { %2047 = vmatmul.mubr.msk.bf16.gmra.mrb[12].mxu1 %vm434_vm2, %v947_v56 }
 0xc23   : > { %v755_v12 = vpop.xlane.xlu0 %754 }
 0xc24   : > { %vm759_vm13 = vcmp.le.f32.partialorder %v2804_v7, %v755_v12 }
 0xc25   : > { %v761_v20 = vsel %vm759_vm13, %v2534_v16, 16 }
 0xc26   : > { %v763_v21 = vsel %vm434_vm2, %v761_v20, 2147483647 }
 0xc27   : > { %v758_v22 = vpop.xlane.xlu1 %757  ;;  %v765_v23 = vshra.s32 %v763_v21, 16 }
 0xc28   : > { %vm760_vm14 = vcmp.le.f32.partialorder %v2808_v8, %v758_v22 }
 0xc29   : > { %v762_v24 = vsel %vm760_vm14, %v2534_v16, 16  ;;  %v767_v25 = vcvt.s32.f32 %v765_v23 }
 0xc2a   : > { %v778_v26 = vsel %vm434_vm2, %v762_v24, 2147483647 }
 0xc2b   : > { %768 = vmin.xlane.f32.xlu0 %v767_v25  ;;  %v780_v27 = vshra.s32 %v778_v26, 16 }
 0xc2d   : > { %v782_v29 = vcvt.s32.f32 %v780_v27 }
 0xc2f   : > { %783 = vmin.xlane.f32.xlu1 %v782_v29 }
 0xc6e   : > { %v2048_v32 = vpop.f32.mrb[12].mxu1 }
 0xc6f   : > { %v1089_v34 = vadd.f32 %v2048_v32, %v2599_v53  ;;  %v1048_v35 = vpop.f32.mrb[13].mxu1 }
 0xc70   : > { %v1087_v36 = vadd.f32 %v1048_v35, %v2599_v53  ;;  %v2049_v37 = vpop.f32.mrb[14].mxu1 }
 0xc71   : > { %v1941_v39 = vmul.f32 -1.442695, %v1089_v34  ;;  %v1090_v40 = vadd.f32 %v2049_v37, %v2601_v54  ;;  %v1051_v38 = vpop.f32.mrb[15].mxu1 }
 0xc72   : > { %v1939_v42 = vmul.f32 -1.442695, %v1087_v36  ;;  %v1088_v44 = vadd.f32 %v1051_v38, %v2601_v54 }
 0xc73   : > { %2230 = vpow2.f32 %v1941_v39  ;;  %v1942_v59 = vmul.f32 -1.442695, %v1090_v40 }
 0xc74   : > { %2232 = vpow2.f32 %v1939_v42  ;;  %v1940_v55 = vmul.f32 -1.442695, %v1088_v44  ;;  %v779_v42 = vand.u32 65535, %v778_v26 }
 0xc75   : > { %2234 = vpow2.f32 %v1942_v59 }
 0xc76   : > { %2236 = vpow2.f32 %v1940_v55  ;;  %v781_v59 = vcvt.s32.f32 %v779_v42 }
 0xc7d   : > { %v2231_v3 = vpop.eup %2230 }
 0xc7e   : > { %v2233_v4 = vpop.eup %2232  ;;  %v1153_v5 = vadd.f32 1.0, %v2231_v3 }
 0xc7f   : > { %v2235_v6 = vpop.eup %2234  ;;  %v1151_v48 = vadd.f32 1.0, %v2233_v4 }
 0xc80   : > { %v2237_v10 = vpop.eup %2236  ;;  %v1154_v56 = vadd.f32 1.0, %v2235_v6 }
 0xc81   : > { %2238 = vrcp.f32 %v1151_v48  ;;  %v1152_v12 = vadd.f32 1.0, %v2237_v10 }
 0xc82   : > { %2240 = vrcp.f32 %v1153_v5 }
 0xc83   : > { %2242 = vrcp.f32 %v1152_v12 }
 0xc84   : > { %2244 = vrcp.f32 %v1154_v56 }
 0xc8b   : > { %v2239_v20 = vpop.eup %2238 }
 0xc8c   : > { %v2241_v22 = vpop.eup %2240  ;;  %v2823_v23 = vmul.f32 %v2239_v20, %v1087_v36  ;;  %v764_v36 = vand.u32 65535, %v763_v21 }
 0xc8d   : > { %v2243_v24 = vpop.eup %2242  ;;  %v2829_v35 = vmul.f32 %v2241_v22, %v1089_v34 }
 0xc8e   : > { %v2825_v27 = vmul.f32 %v2243_v24, %v1088_v44  ;;  %2074 = vmatprep.mubr.msk.f32.mxu0 %vm1211_vm3, %v2823_v23  ;;  %v2245_v32 = vpop.eup %2244  ;;  %v766_v38 = vcvt.s32.f32 %v764_v36 }
 0xc8f   : > { %v2835_v37 = vmul.f32 %v2245_v32, %v1090_v40 }
 0xc90   : > { %2075 = vmatmul.mubr.msk.f32.gmra.mrb[10].mxu0 %vm1211_vm3, %v2825_v27 }
 0xc91   : > { %2077 = vmatprep.mubr.msk.f32.mxu0 %vm1211_vm3, %v2829_v35 }
 0xc94   : > { %2078 = vmatmul.mubr.msk.f32.gmra.mrb[12].mxu0 %vm1211_vm3, %v2835_v37 }
 0xcb8   : > { %v769_v39 = vpop.xlane.xlu0 %768 }
 0xcb9   : > { %vm770_vm15 = vcmp.eq.f32.partialorder %v767_v25, %v769_v39  ;;  %v775_v3 = vcvt.f32.s32 %v769_v39 }
 0xcba   : > { %v771_v44 = vsel %vm770_vm15, %v766_v38, inf }
 0xcbb   : > { %772 = vmin.xlane.f32.xlu0 %v771_v44  ;;  %v776_v5 = vshll.u32 %v775_v3, 16 }
 0xcbc   : > { %v784_v34 = vpop.xlane.xlu1 %783 }
 0xcbd   : > { %vm785_vm0 = vcmp.eq.f32.partialorder %v782_v29, %v784_v34  ;;  %v790_v40 = vcvt.f32.s32 %v784_v34 }
 0xcbe   : > { %v786_v55 = vsel %vm785_vm0, %v781_v59, inf }
 0xcbf   : > { %787 = vmin.xlane.f32.xlu1 %v786_v55  ;;  %v791_v56 = vshll.u32 %v790_v40, 16 }
 0xd48   : > { %v773_v4 = vpop.xlane.xlu0 %772 }
 0xd49   : > { %v774_v6 = vcvt.f32.s32 %v773_v4 }
 0xd4b   : > { %v777_v48 = vadd.s32 %v776_v5, %v774_v6 }
 0xd4c   : > { %v788_v10 = vpop.xlane.xlu1 %787 }
 0xd4d   : > { %vm793_vm1 = vcmp.eq.s32.totalorder %v2534_v16, %v777_v48  ;;  %v789_v21 = vcvt.f32.s32 %v788_v10 }
 0xd4e   : > { %v795_v25 = vsel %vm793_vm1, inf, %v2804_v7  ;;  %v799_v29 = vsel %vm793_vm1, 1.0, %v2410_v47 }
 0xd4f   : > { %797 = vst.msk [vmem:[#allocation2] sm:$0xff] %vm434_vm2, %v795_v25  ;;  %v792_v26 = vadd.s32 %v791_v56, %v789_v21 }
 0xd51   : > { %vm794_vm4 = vcmp.eq.s32.totalorder %v2534_v16, %v792_v26 }
 0xd52   : > { %v796_v12 = vsel %vm794_vm4, inf, %v2808_v8  ;;  %v800_v20 = vsel %vm794_vm4, 1.0, %v2410_v47 }
 0xd53   : > { %798 = vst.msk [vmem:[#allocation2 + $0x8] sm:$0xff] %vm434_vm2, %v796_v12  ;;  %v801_v22 = vpack.c.bf16 %v800_v20, %v799_v29 }
 0xd55   : > { %802 = vst.msk [vmem:[#allocation3 + $0x30] sm:$0xff] %vm434_vm2, %v801_v22 }
 0xd56   : > { %v2848_v24 = vld [vmem:[#allocation2] sm:$0xff] }
 0xd57   : > { %v805_v7 = vsel %vm434_vm2, %v2848_v24, inf }
 0xd58   : > { %806 = vmin.xlane.f32.xlu0 %v805_v7 }
 0xd5a   : > { %v2852_v32 = vld [vmem:[#allocation2 + $0x8] sm:$0xff] }
 0xd5b   : > { %v808_v36 = vsel %vm434_vm2, %v2852_v32, inf }
 0xd5c   : > { %809 = vmin.xlane.f32.xlu1 %v808_v36  ;;  %v948_v8 = vld [vmem:[#allocation3 + $0x30] sm:$0xff] }
 0xd5d   : > { %2050 = vmatprep.mubr.msk.bf16.mxu1 %vm434_vm2, %v948_v8 }
 0xd63   : > { %v2076_v39 = vpop.f32.mrb[10].mxu0 }
 0xd64   : > { %v1421_v38 = vadd.f32 %v2076_v39, %v2697_v28  ;;  %v1366_v42 = vpop.f32.mrb[11].mxu0 }
 0xd65   : > { %v1420_v44 = vadd.f32 %v2697_v28, %v1366_v42 }
 0xd66   : > { %v1973_v34 = vmul.f32 -1.442695, %v1421_v38 }
 0xd67   : > { %v1972_v59 = vmul.f32 -1.442695, %v1420_v44  ;;  %v2079_v55 = vpop.f32.mrb[12].mxu0 }
 0xd68   : > { %2246 = vpow2.f32 %v1973_v34  ;;  %v1423_v3 = vadd.f32 %v2079_v55, %v2697_v28  ;;  %v1376_v4 = vpop.f32.mrb[13].mxu0 }
 0xd69   : > { %2248 = vpow2.f32 %v1972_v59  ;;  %v1422_v5 = vadd.f32 %v2697_v28, %v1376_v4 }
 0xd6a   : > { %v1975_v40 = vmul.f32 -1.442695, %v1423_v3 }
 0xd6b   : > { %v1974_v6 = vmul.f32 -1.442695, %v1422_v5 }
 0xd6c   : > { %2250 = vpow2.f32 %v1975_v40 }
 0xd6d   : > { %2252 = vpow2.f32 %v1974_v6 }
 0xd72   : > { %v2247_v48 = vpop.eup %2246 }
 0xd73   : > { %v2249_v10 = vpop.eup %2248  ;;  %v1485_v56 = vadd.f32 1.0, %v2247_v48 }
 0xd74   : > { %v1484_v21 = vadd.f32 1.0, %v2249_v10 }
 0xd75   : > { %2254 = vrcp.f32 %v1485_v56 }
 0xd76   : > { %v2251_v25 = vpop.eup %2250  ;;  %2256 = vrcp.f32 %v1484_v21 }
 0xd77   : > { %v2253_v26 = vpop.eup %2252  ;;  %v1487_v29 = vadd.f32 1.0, %v2251_v25 }
 0xd78   : > { %v1486_v12 = vadd.f32 1.0, %v2253_v26 }
 0xd79   : > { %2258 = vrcp.f32 %v1487_v29 }
 0xd7a   : > { %2260 = vrcp.f32 %v1486_v12 }
 0xd7f   : > { %v2255_v20 = vpop.eup %2254 }
 0xd80   : > { %v2257_v22 = vpop.eup %2256  ;;  %v2861_v7 = vmul.f32 %v2255_v20, %v1421_v38 }
 0xd81   : > { %v2863_v36 = vmul.f32 %v2257_v22, %v1420_v44 }
 0xd82   : > { %v1562_v8 = vsel %vm1540_vm6, %v2861_v7, -inf }
 0xd83   : > { %v2259_v39 = vpop.eup %2258  ;;  %v2870_v42 = vmax.f32 %v1559_v60, %v1562_v8  ;;  %v1547_v34 = vsel %vm1540_vm6, %v2863_v36, -inf }
 0xd84   : > { %v2261_v59 = vpop.eup %2260  ;;  %v2877_v38 = vmax.f32 %v1544_v51, %v1547_v34  ;;  %v2879_v44 = vmul.f32 %v2259_v39, %v1423_v3 }
 0xd85   : > { %v2881_v55 = vmul.f32 %v2261_v59, %v1422_v5 }
 0xd86   : > { %v1564_v4 = vsel %vm1540_vm6, %v2879_v44, -inf }
 0xd87   : > { %v2888_v31 = vmax.f32 %v1561_v0, %v1564_v4  ;;  %v1549_v49 = vsel %vm1540_vm6, %v2881_v55, -inf }
 0xd88   : > { %v2895_v33 = vmax.f32 %v1546_v2, %v1549_v49 }
 0xde5   : > { %v807_v60 = vpop.xlane.xlu0 %806 }
 0xde6   : > { %vm811_vm5 = vcmp.le.f32.partialorder %v2848_v24, %v807_v60 }
 0xde7   : > { %v813_v30 = vsel %vm811_vm5, %v2534_v16, 16 }
 0xde8   : > { %v815_v51 = vsel %vm434_vm2, %v813_v30, 2147483647 }
 0xde9   : > { %v810_v3 = vpop.xlane.xlu1 %809  ;;  %v817_v5 = vshra.s32 %v815_v51, 16  ;;  %v816_v2 = vand.u32 65535, %v815_v51 }
 0xdea   : > { %vm812_vm7 = vcmp.le.f32.partialorder %v2852_v32, %v810_v3 }
 0xdeb   : > { %v814_v62 = vsel %vm812_vm7, %v2534_v16, 16  ;;  %v819_v57 = vcvt.s32.f32 %v817_v5  ;;  %v818_v6 = vcvt.s32.f32 %v816_v2 }
 0xdec   : > { %v830_v0 = vsel %vm434_vm2, %v814_v62, 2147483647 }
 0xded   : > { %820 = vmin.xlane.f32.xlu0 %v819_v57  ;;  %v832_v63 = vshra.s32 %v830_v0, 16  ;;  %v831_v48 = vand.u32 65535, %v830_v0 }
 0xdef   : > { %v834_v1 = vcvt.s32.f32 %v832_v63  ;;  %v833_v21 = vcvt.s32.f32 %v831_v48 }
 0xdf1   : > { %835 = vmin.xlane.f32.xlu1 %v834_v1 }
 0xe7a   : > { %v821_v40 = vpop.xlane.xlu0 %820 }
 0xe7b   : > { %vm822_vm8 = vcmp.eq.f32.partialorder %v819_v57, %v821_v40  ;;  %v827_v26 = vcvt.f32.s32 %v821_v40 }
 0xe7c   : > { %v823_v10 = vsel %vm822_vm8, %v818_v6, inf }
 0xe7d   : > { %824 = vmin.xlane.f32.xlu0 %v823_v10  ;;  %v828_v12 = vshll.u32 %v827_v26, 16 }
 0xe7e   : > { %v836_v56 = vpop.xlane.xlu1 %835 }
 0xe7f   : > { %vm837_vm9 = vcmp.eq.f32.partialorder %v834_v1, %v836_v56  ;;  %v842_v20 = vcvt.f32.s32 %v836_v56 }
 0xe80   : > { %v838_v25 = vsel %vm837_vm9, %v833_v21, inf }
 0xe81   : > { %839 = vmin.xlane.f32.xlu1 %v838_v25  ;;  %v843_v34 = vshll.u32 %v842_v20, 16 }
 0xf0a   : > { %v825_v29 = vpop.xlane.xlu0 %824 }
 0xf0b   : > { %v826_v22 = vcvt.f32.s32 %v825_v29 }
 0xf0d   : > { %v829_v8 = vadd.s32 %v828_v12, %v826_v22 }
 0xf0e   : > { %v840_v39 = vpop.xlane.xlu1 %839 }
 0xf0f   : > { %vm845_vm10 = vcmp.eq.s32.totalorder %v2534_v16, %v829_v8  ;;  %v841_v59 = vcvt.f32.s32 %v840_v39 }
 0xf10   : > { %v847_v4 = vsel %vm845_vm10, inf, %v2848_v24  ;;  %v851_v60 = vsel %vm845_vm10, 1.0, %v2410_v47 }
 0xf11   : > { %849 = vst.msk [vmem:[#allocation2] sm:$0xff] %vm434_vm2, %v847_v4  ;;  %v844_v49 = vadd.s32 %v843_v34, %v841_v59  ;;  %v2411_v4 = vmov 0  }
 0xf12   : > { %2164 = vset.pattern.permute.xlu0 %v2411_v4  ;;  %2163 = vset.pattern.permute.xlu1 %v2411_v4 }
 0xf13   : > { %vm846_vm11 = vcmp.eq.s32.totalorder %v2534_v16, %v844_v49 }
 0xf14   : > { %v848_v30 = vsel %vm846_vm11, inf, %v2852_v32  ;;  %v852_v51 = vsel %vm846_vm11, 1.0, %v2410_v47 }
 0xf15   : > { %850 = vst.msk [vmem:[#allocation2 + $0x8] sm:$0xff] %vm434_vm2, %v848_v30  ;;  %v853_v3 = vpack.c.bf16 %v852_v51, %v851_v60 }
 0xf17   : > { %854 = vst.msk [vmem:[#allocation3 + $0x38] sm:$0xff] %vm434_vm2, %v853_v3 }
 0xf1e   : > { %v949_v5 = vld [vmem:[#allocation3 + $0x38] sm:$0xff] }
 0xf1f   : > { %2051 = vmatmul.mubr.msk.bf16.gmra.mrb[16].mxu1 %vm434_vm2, %v949_v5 }
 0xff2   : > { %v2052_v24 = vpop.f32.mrb[16].mxu1 }
 0xff3   : > { %v1093_v62 = vadd.f32 %v2052_v24, %v2599_v53  ;;  %v1064_v57 = vpop.f32.mrb[17].mxu1 }
 0xff4   : > { %v1091_v16 = vadd.f32 %v1064_v57, %v2599_v53  ;;  %v2053_v0 = vpop.f32.mrb[18].mxu1 }
 0xff5   : > { %v1945_v63 = vmul.f32 -1.442695, %v1093_v62  ;;  %v1094_v32 = vadd.f32 %v2053_v0, %v2601_v54  ;;  %v1067_v1 = vpop.f32.mrb[19].mxu1 }
 0xff6   : > { %v1943_v47 = vmul.f32 -1.442695, %v1091_v16  ;;  %v1092_v2 = vadd.f32 %v1067_v1, %v2601_v54 }
 0xff7   : > { %2262 = vpow2.f32 %v1945_v63  ;;  %v1946_v40 = vmul.f32 -1.442695, %v1094_v32 }
 0xff8   : > { %2264 = vpow2.f32 %v1943_v47  ;;  %v1944_v6 = vmul.f32 -1.442695, %v1092_v2 }
 0xff9   : > { %2266 = vpow2.f32 %v1946_v40 }
 0xffa   : > { %2268 = vpow2.f32 %v1944_v6 }
0x1001   : > { %v2263_v48 = vpop.eup %2262 }
0x1002   : > { %v2265_v10 = vpop.eup %2264  ;;  %v1157_v56 = vadd.f32 1.0, %v2263_v48 }
0x1003   : > { %v2267_v21 = vpop.eup %2266  ;;  %v1155_v25 = vadd.f32 1.0, %v2265_v10 }
0x1004   : > { %v2269_v53 = vpop.eup %2268  ;;  %2270 = vrcp.f32 %v1157_v56  ;;  %v1158_v26 = vadd.f32 1.0, %v2267_v21 }
0x1005   : > { %2272 = vrcp.f32 %v1155_v25  ;;  %v1156_v29 = vadd.f32 1.0, %v2269_v53 }
0x1006   : > { %2274 = vrcp.f32 %v1158_v26 }
0x1007   : > { %2276 = vrcp.f32 %v1156_v29 }
0x100e   : > { %v2271_v12 = vpop.eup %2270 }
0x100f   : > { %v2273_v54 = vpop.eup %2272  ;;  %v2917_v20 = vmul.f32 %v2271_v12, %v1093_v62 }
0x1010   : > { %v2275_v22 = vpop.eup %2274  ;;  %v2919_v8 = vmul.f32 %v2273_v54, %v1091_v16 }
0x1011   : > { %v2277_v39 = vpop.eup %2276  ;;  %v2921_v34 = vmul.f32 %v2275_v22, %v1094_v32  ;;  %2083 = vmatprep.mubr.msk.f32.mxu1 %vm1211_vm3, %v2917_v20 }
0x1012   : > { %v2925_v59 = vmul.f32 %v2277_v39, %v1092_v2  ;;  %2080 = vmatprep.mubr.msk.f32.mxu0 %vm1211_vm3, %v2919_v8 }
0x1013   : > { %2084 = vmatmul.mubr.msk.f32.vlgmr.msra.gmra.mrb[2].mxu1 %vm1211_vm3, %v2921_v34 }
0x1014   : > { %2081 = vmatmul.mubr.msk.f32.gmra.mrb[14].mxu0 %vm1211_vm3, %v2925_v59 }
0x10e6   : > { %v2085_v49 = vpop.f32.mrb[2].mxu1 }
0x10e7   : > { %v1427_v60 = vadd.f32 %v2085_v49, %v2697_v28  ;;  %v2082_v30 = vpop.f32.mrb[14].mxu0  ;;  %v1396_v51 = vpop.f32.mrb[3].mxu1 }
0x10e8   : > { %v1425_v3 = vadd.f32 %v2082_v30, %v2697_v28  ;;  %v1426_v5 = vadd.f32 %v2697_v28, %v1396_v51  ;;  %v1386_v24 = vpop.f32.mrb[15].mxu0 }
0x10e9   : > { %v1979_v62 = vmul.f32 -1.442695, %v1427_v60  ;;  %v1424_v57 = vadd.f32 %v2697_v28, %v1386_v24 }
0x10ea   : > { %v1977_v16 = vmul.f32 -1.442695, %v1425_v3  ;;  %v1978_v0 = vmul.f32 -1.442695, %v1426_v5 }
0x10eb   : > { %2278 = vpow2.f32 %v1979_v62  ;;  %v1976_v63 = vmul.f32 -1.442695, %v1424_v57 }
0x10ec   : > { %2280 = vpow2.f32 %v1977_v16 }
0x10ed   : > { %2282 = vpow2.f32 %v1978_v0 }
0x10ee   : > { %2284 = vpow2.f32 %v1976_v63 }
0x10f5   : > { %v2279_v32 = vpop.eup %2278 }
0x10f6   : > { %v2281_v1 = vpop.eup %2280  ;;  %v1491_v47 = vadd.f32 1.0, %v2279_v32 }
0x10f7   : > { %v2283_v2 = vpop.eup %2282  ;;  %v1489_v40 = vadd.f32 1.0, %v2281_v1 }
0x10f8   : > { %v2285_v6 = vpop.eup %2284  ;;  %2286 = vrcp.f32 %v1491_v47  ;;  %v1490_v48 = vadd.f32 1.0, %v2283_v2 }
0x10f9   : > { %2288 = vrcp.f32 %v1489_v40  ;;  %v1488_v10 = vadd.f32 1.0, %v2285_v6 }
0x10fa   : > { %2290 = vrcp.f32 %v1490_v48 }
0x10fb   : > { %2292 = vrcp.f32 %v1488_v10 }
0x1102   : > { %v2287_v28 = vpop.eup %2286 }
0x1103   : > { %v2289_v56 = vpop.eup %2288  ;;  %v1539_v21 = vmul.f32 %v2287_v28, %v1427_v60 }
0x1104   : > { %v2291_v25 = vpop.eup %2290  ;;  %v1537_v53 = vmul.f32 %v2289_v56, %v1425_v3 }
0x1105   : > { %v2293_v26 = vpop.eup %2292  ;;  %v1568_v29 = vsel %vm1540_vm6, %v1539_v21, -inf  ;;  %v2938_v12 = vmul.f32 %v2291_v25, %v1426_v5 }
0x1106   : > { %v1569_v54 = vmax.f32 %v2888_v31, %v1568_v29  ;;  %v1566_v22 = vsel %vm1540_vm6, %v1537_v53, -inf  ;;  %v1536_v39 = vmul.f32 %v2293_v26, %v1424_v57 }
0x1107   : > { %v1567_v4 = vmax.f32 %v2870_v42, %v1566_v22  ;;  %v1553_v49 = vsel %vm1540_vm6, %v2938_v12, -inf }
0x1108   : > { %v1554_v30 = vmax.f32 %v2895_v33, %v1553_v49  ;;  %v1551_v60 = vsel %vm1540_vm6, %v1536_v39, -inf }
0x1109   : > { %v1570_v51 = vmax.f32 %v1567_v4, %v1569_v54  ;;  %v1552_v3 = vmax.f32 %v2877_v38, %v1551_v60 }
0x110b   : > { %v1584_v24 = vsub.f32 %v1537_v53, %v1570_v51  ;;  %v1555_v5 = vmax.f32 %v1552_v3, %v1554_v30  ;;  %v1580_v62 = vsub.f32 %v2861_v7, %v1570_v51  ;;  %v1572_v31 = vsub.f32 %v2730_v41, %v1570_v51 }
0x110c   : > { %v1582_v57 = vsub.f32 %v2879_v44, %v1570_v51  ;;  %v1574_v42 = vsub.f32 %v2744_v58, %v1570_v51  ;;  %v1576_v16 = vsub.f32 %v2735_v45, %v1570_v51  ;;  %v1578_v0 = vsub.f32 %v2765_v52, %v1570_v51 }
0x110d   : > { %v1583_v33 = vsub.f32 %v1536_v39, %v1555_v5  ;;  %v1605_v63 = vmul.f32 1.442695, %v1580_v62  ;;  %v1589_v32 = vmul.f32 1.442695, %v1572_v31  ;;  %v1571_v1 = vsub.f32 %v2733_v43, %v1555_v5 }
0x110e   : > { %v1609_v38 = vmul.f32 1.442695, %v1582_v57  ;;  %v1586_v47 = vsub.f32 %v1539_v21, %v1570_v51  ;;  %v1593_v2 = vmul.f32 1.442695, %v1574_v42  ;;  %v1573_v7 = vsub.f32 %v2755_v50, %v1555_v5 }
0x110f   : > { %2294 = vpow2.f32 %v1605_v63  ;;  %v1575_v41 = vsub.f32 %v2737_v46, %v1555_v5  ;;  %v1597_v44 = vmul.f32 1.442695, %v1576_v16  ;;  %v1577_v58 = vsub.f32 %v2767_v61, %v1555_v5 }
0x1110   : > { %v1579_v45 = vsub.f32 %v2863_v36, %v1555_v5  ;;  %2296 = vpow2.f32 %v1589_v32  ;;  %v1587_v52 = vmul.f32 1.442695, %v1571_v1  ;;  %v1581_v40 = vsub.f32 %v2881_v55, %v1555_v5 }
0x1111   : > { %2298 = vpow2.f32 %v1609_v38  ;;  %v1601_v6 = vmul.f32 1.442695, %v1578_v0  ;;  %v1585_v43 = vsub.f32 %v2938_v12, %v1555_v5  ;;  %v1591_v48 = vmul.f32 1.442695, %v1573_v7 }
0x1112   : > { %2300 = vpow2.f32 %v1593_v2  ;;  %v1595_v50 = vmul.f32 1.442695, %v1575_v41  ;;  %v1599_v46 = vmul.f32 1.442695, %v1577_v58  ;;  %v1613_v10 = vmul.f32 1.442695, %v1584_v24 }
0x1113   : > { %2302 = vpow2.f32 %v1597_v44  ;;  %v1603_v61 = vmul.f32 1.442695, %v1579_v45  ;;  %v1617_v36 = vmul.f32 1.442695, %v1586_v47  ;;  %v1607_v55 = vmul.f32 1.442695, %v1581_v40 }
0x1114   : > { %2304 = vpow2.f32 %v1587_v52  ;;  %v1611_v25 = vmul.f32 1.442695, %v1583_v33  ;;  %v1615_v54 = vmul.f32 1.442695, %v1585_v43 }
0x1115   : > { %2306 = vpow2.f32 %v1601_v6 }
0x1116   : > { %2308 = vpow2.f32 %v1591_v48 }
0x1117   : > { %2310 = vpow2.f32 %v1595_v50 }
0x1118   : > { %2312 = vpow2.f32 %v1599_v46 }
0x1119   : > { %v2295_v28 = vpop.eup %2294  ;;  %2314 = vpow2.f32 %v1613_v10 }
0x111a   : > { %1696 = vperm.xlu0 %2164, %v2295_v28   ;;  %v2297_v56 = vpop.eup %2296  ;;  %2316 = vpow2.f32 %v1603_v61  ;;  %v1641_v57 = vsel %vm1540_vm6, %v2295_v28, 0.0 }
0x111b   : > { %v2299_v21 = vpop.eup %2298  ;;  %1656 = vperm.xlu1 %2163, %v2297_v56   ;;  %v1634_v53 = vsel %vm1540_vm6, %v2297_v56, 0.0  ;;  %2318 = vpow2.f32 %v1617_v36 }
0x111c   : > { %v2301_v26 = vpop.eup %2300  ;;  %2320 = vpow2.f32 %v1607_v55  ;;  %v1643_v32 = vsel %vm1540_vm6, %v2299_v21, 0.0 }
0x111d   : > { %v2303_v29 = vpop.eup %2302  ;;  %v1635_v12 = vsel %vm1540_vm6, %v2301_v26, 0.0  ;;  %2322 = vpow2.f32 %v1611_v25 }
0x111e   : > { %1706 = vperm.xlu0 %2164, %v2299_v21   ;;  %v2305_v22 = vpop.eup %2304  ;;  %v1636_v39 = vadd.f32 %v1635_v12, %v1634_v53  ;;  %v1637_v49 = vsel %vm1540_vm6, %v2303_v29, 0.0  ;;  %2324 = vpow2.f32 %v1615_v54 }
0x111f   : > { %v2307_v4 = vpop.eup %2306  ;;  %1666 = vperm.xlu1 %2163, %v2301_v26   ;;  %v1619_v60 = vsel %vm1540_vm6, %v2305_v22, 0.0 }
0x1120   : > { %v1638_v30 = vadd.f32 %v1637_v49, %v1636_v39  ;;  %v2309_v51 = vpop.eup %2308  ;;  %v1639_v3 = vsel %vm1540_vm6, %v2307_v4, 0.0 }
0x1121   : > { %v2311_v24 = vpop.eup %2310  ;;  %v1620_v62 = vsel %vm1540_vm6, %v2309_v51, 0.0 }
0x1122   : > { %1651 = vperm.xlu0 %2164, %v2305_v22   ;;  %v1640_v5 = vadd.f32 %v1639_v3, %v1638_v30  ;;  %v2313_v31 = vpop.eup %2312  ;;  %v1621_v42 = vadd.f32 %v1620_v62, %v1619_v60  ;;  %v1622_v33 = vsel %vm1540_vm6, %v2311_v24, 0.0 }
0x1123   : > { %1676 = vperm.xlu1 %2163, %v2303_v29   ;;  %v2315_v16 = vpop.eup %2314  ;;  %v1624_v2 = vsel %vm1540_vm6, %v2313_v31, 0.0 }
0x1124   : > { %v1642_v0 = vadd.f32 %v1641_v57, %v1640_v5  ;;  %v2317_v63 = vpop.eup %2316  ;;  %v1623_v1 = vadd.f32 %v1622_v33, %v1621_v42  ;;  %v1645_v41 = vsel %vm1540_vm6, %v2315_v16, 0.0 }
0x1125   : > { %v2319_v38 = vpop.eup %2318  ;;  %v1626_v45 = vsel %vm1540_vm6, %v2317_v63, 0.0 }
0x1126   : > { %v1644_v47 = vadd.f32 %v1643_v32, %v1642_v0  ;;  %v2321_v7 = vpop.eup %2320  ;;  %v1625_v44 = vadd.f32 %v1624_v2, %v1623_v1  ;;  %v1647_v40 = vsel %vm1540_vm6, %v2319_v38, 0.0 }
0x1127   : > { %1686 = vperm.xlu1 %2163, %v2307_v4   ;;  %v2323_v52 = vpop.eup %2322  ;;  %v1628_v48 = vsel %vm1540_vm6, %v2321_v7, 0.0 }
0x1128   : > { %v1646_v58 = vadd.f32 %v1645_v41, %v1644_v47  ;;  %v1627_v6 = vadd.f32 %v1626_v45, %v1625_v44  ;;  %v2325_v50 = vpop.eup %2324  ;;  %v1630_v10 = vsel %vm1540_vm6, %v2323_v52, 0.0 }
0x1129   : > { %v1632_v28 = vsel %vm1540_vm6, %v2325_v50, 0.0 }
0x112a   : > { %v1648_v43 = vadd.f32 %v1647_v40, %v1646_v58  ;;  %v1629_v46 = vadd.f32 %v1628_v48, %v1627_v6 }
0x112b   : > { %1661 = vperm.xlu1 %2163, %v2309_v51  }
0x112c   : > { %1782 = vperm.xlu0 %2164, %v1648_v43   ;;  %v1631_v61 = vadd.f32 %v1630_v10, %v1629_v46 }
0x112e   : > { %v1633_v36 = vadd.f32 %v1632_v28, %v1631_v61 }
0x112f   : > { %1671 = vperm.xlu1 %2163, %v2311_v24  }
0x1130   : > { %1716 = vperm.xlu0 %2164, %v2315_v16  }
0x1133   : > { %1681 = vperm.xlu1 %2163, %v2313_v31  }
0x1134   : > { %1726 = vperm.xlu0 %2164, %v2319_v38  }
0x1137   : > { %1691 = vperm.xlu1 %2163, %v2317_v63  }
0x113b   : > { %1701 = vperm.xlu1 %2163, %v2321_v7  }
0x113f   : > { %1777 = vperm.xlu1 %2163, %v1633_v36  }
0x1143   : > { %1711 = vperm.xlu1 %2163, %v2323_v52  }
0x1147   : > { %1721 = vperm.xlu1 %2163, %v2325_v50  }
0x1199   : > { %v1697_v56 = vpop.permute.xlu0 %1696 }
0x119a   : > { %v1657_v55 = vpop.permute.xlu1 %1656  ;;  %v1738_v51 = vmul.f32 %v1697_v56, %v2825_v27 }
0x119b   : > { %v1730_v53 = vmul.f32 %v1657_v55, %v2609_v15 }
0x119d   : > { %v1707_v26 = vpop.permute.xlu0 %1706  ;;  %v1760_v22 = vsel %vm1211_vm3, %v1730_v53, 0.0 }
0x119e   : > { %v1667_v21 = vpop.permute.xlu1 %1666  ;;  %v1740_v62 = vmul.f32 %v1707_v26, %v2835_v37 }
0x119f   : > { %v1732_v25 = vmul.f32 %v1667_v21, %v2619_v19 }
0x11a1   : > { %v1761_v12 = vsel %vm1211_vm3, %v1732_v25, 0.0  ;;  %v1652_v30 = vpop.permute.xlu0 %1651 }
0x11a2   : > { %v1677_v29 = vpop.permute.xlu1 %1676  ;;  %v1762_v4 = vadd.f32 %v1761_v12, %v1760_v22 }
0x11a3   : > { %v1734_v54 = vmul.f32 %v1677_v29, %v2675_v11  ;;  %v1767_v11 = vsel %vm1211_vm3, %v1738_v51, 0.0 }
0x11a5   : > { %v1763_v39 = vsel %vm1211_vm3, %v1734_v54, 0.0 }
0x11a6   : > { %v1687_v49 = vpop.permute.xlu1 %1686  ;;  %v1764_v19 = vadd.f32 %v1763_v39, %v1762_v4 }
0x11a7   : > { %v1736_v60 = vmul.f32 %v1687_v49, %v2685_v17  ;;  %v1769_v17 = vsel %vm1211_vm3, %v1740_v62, 0.0 }
0x11a9   : > { %v1765_v15 = vsel %vm1211_vm3, %v1736_v60, 0.0 }
0x11aa   : > { %v1766_v3 = vadd.f32 %v1765_v15, %v1764_v19  ;;  %v1662_v24 = vpop.permute.xlu1 %1661 }
0x11ab   : > { %v1783_v5 = vpop.permute.xlu0 %1782  ;;  %v1731_v47 = vmul.f32 %v1662_v24, %v2613_v18 }
0x11ac   : > { %v1768_v31 = vadd.f32 %v1767_v11, %v1766_v3  ;;  %2326 = vrcp.f32 %v1783_v5 }
0x11ad   : > { %v1746_v45 = vsel %vm1211_vm3, %v1731_v47, 0.0 }
0x11ae   : > { %v1672_v57 = vpop.permute.xlu1 %1671  ;;  %v1770_v16 = vadd.f32 %v1769_v17, %v1768_v31 }
0x11af   : > { %v1717_v42 = vpop.permute.xlu0 %1716  ;;  %v1733_v41 = vmul.f32 %v1672_v57, %v2673_v9 }
0x11b0   : > { %v1742_v27 = vmul.f32 %v1717_v42, %v2925_v59  ;;  %v1729_v59 = vmul.f32 %v1652_v30, %v2607_v13 }
0x11b1   : > { %v1748_v18 = vsel %vm1211_vm3, %v1733_v41, 0.0 }
0x11b2   : > { %v1771_v0 = vsel %vm1211_vm3, %v1742_v27, 0.0  ;;  %v1682_v33 = vpop.permute.xlu1 %1681  ;;  %v1745_v52 = vsel %vm1211_vm3, %v1729_v59, 0.0 }
0x11b3   : > { %v1727_v63 = vpop.permute.xlu0 %1726  ;;  %v1772_v1 = vadd.f32 %v1771_v0, %v1770_v16  ;;  %v1747_v13 = vadd.f32 %v1746_v45, %v1745_v52 }
0x11b4   : > { %v1744_v32 = vmul.f32 %v1727_v63, %v2921_v34  ;;  %v1735_v34 = vmul.f32 %v1682_v33, %v2679_v14 }
0x11b5   : > { %v1749_v48 = vadd.f32 %v1748_v18, %v1747_v13 }
0x11b6   : > { %v1773_v37 = vsel %vm1211_vm3, %v1744_v32, 0.0  ;;  %v1692_v38 = vpop.permute.xlu1 %1691  ;;  %v2327_v7 = vpop.eup %2326  ;;  %v1750_v9 = vsel %vm1211_vm3, %v1735_v34, 0.0 }
0x11b7   : > { %v1774_v2 = vadd.f32 %v1773_v37, %v1772_v1  ;;  %v1737_v40 = vmul.f32 %v1692_v38, %v2823_v23  ;;  %v1751_v46 = vadd.f32 %v1750_v9, %v1749_v48 }
0x11b9   : > { %v1788_v44 = vmul.f32 %v2327_v7, %v1774_v2  ;;  %v1752_v50 = vsel %vm1211_vm3, %v1737_v40, 0.0 }
0x11ba   : > { %v1702_v58 = vpop.permute.xlu1 %1701  ;;  %v1753_v23 = vadd.f32 %v1752_v50, %v1751_v46 }
0x11bb   : > { %1790 = vst.msk [vmem:[%s3000_s11 + $0x8] sm:$0xff] %vm1211_vm3, %v1788_v44  ;;  %v1739_v43 = vmul.f32 %v1702_v58, %v2829_v35 }
0x11bd   : > { %v1754_v10 = vsel %vm1211_vm3, %v1739_v43, 0.0 }
0x11be   : > { %v1778_v6 = vpop.permute.xlu1 %1777  ;;  %v1755_v36 = vadd.f32 %v1754_v10, %v1753_v23 }
0x11bf   : > { %2328 = vrcp.f32 %v1778_v6 }
0x11c2   : > { %v1712_v14 = vpop.permute.xlu1 %1711 }
0x11c3   : > { %v1741_v61 = vmul.f32 %v1712_v14, %v2919_v8 }
0x11c5   : > { %v1756_v28 = vsel %vm1211_vm3, %v1741_v61, 0.0 }
0x11c6   : > { %v1722_v55 = vpop.permute.xlu1 %1721  ;;  %v1757_v56 = vadd.f32 %v1756_v28, %v1755_v36 }
0x11c7   : > { %v1743_v35 = vmul.f32 %v1722_v55, %v2917_v20 }
0x11c9   : > { %v1758_v21 = vsel %vm1211_vm3, %v1743_v35, 0.0  ;;  %v2329_v53 = vpop.eup %2328 }
0x11ca   : > { %v1759_v25 = vadd.f32 %v1758_v21, %v1757_v56 }
0x11cc   : > { %v1786_v8 = vmul.f32 %v2329_v53, %v1759_v25 }
0x11ce   : > { %1789 = vst.msk [vmem:[%s3000_s11] sm:$0xff] %vm1211_vm3, %v1786_v8 }
0x11cf   : > { %2343 = shalt.err (!%p2340_p5)
}
0x11d0   : > { %s2344_s24 = scalar_lea.hbm %s3021_s19, 256  ;;  %s2348_s9 = scalar_lea.hbm %s3082_s7, 512 }
0x11d1   : > { %p2345_p6 = scmp.ne.s32.totalorder %s3021_s19, %s2344_s24  ;;  %p2349_p10 = scmp.lt.u32.totalorder %s3021_s19, %s3082_s7 }
0x11d2   : > { %p2350_p11 = scmp.lt.u32.totalorder %s2348_s9, %s2344_s24  ;;  %p2352_p13 = scmp.lt.u32.totalorder %s2344_s24, %s3021_s19 }
0x11d3   : > { %p2346_p7 = pnand %p2345_p6, %p2498_p4 }
0x11d4   : > { %p2351_p12 = por %p2350_p11, %p2349_p10 }
0x11d5   : > { %p2347_p9 = pneg %p2346_p7 }
0x11d6   : > { %p2353_p0 = por %p2352_p13, %p2351_p12 }
0x11d8   : > { %p2354_p1 = pnand %p2353_p0, %p2347_p9 }
0x11da   : > { %2357 = shalt.err (!%p2354_p1)
}
0x11db   : > { %s2413_s17 = smov 128   ;;  %s2414_s18 = smov 8  }
0x11dc   : > { %2104 = dma.vmem_to_hbm [thread:$0]  (%p2498_p4), %s3023_s16, 256, %s3021_s19, %s3029_s29, %s2413_s17, %s2413_s17, %s2414_s18  }
0x11dd PF: > { %p2110_p2 = scmp.ge.s32.totalorder %s2408_s8, 2  ;;  %s1822_s20 = sand.u32 1, %s2388_s26  }
0x11de   : > { %s1823_s21 = scalar_lea.sflag [#allocation6], %s1822_s20 }
0x11df   : > { %p2107_p3 = pnand %p2110_p2, %p2505_p8 }
0x11e1   : > { %2383 = dma.done.wait (!%p2107_p3), %s1823_s21, 256  }
0x11e2   : > { %2385 = vsyncadd (!%p2107_p3), %s1823_s21, 4294967040  ;;  %s22_s8 = sadd.s32 1, %s2408_s8   ;;  %s3085_s26 = smov %s2392_s27 }
0x11e3   : > { %p19_p5 = scmp.ge.s32.totalorder %s22_s8, 4   ;;  %s3086_s27 = smov %s2396_s28 }
0x11e4   : > { %s3087_s28 = smov %s2511_s15  ;;  %s3088_s29 = smov %s2404_s30 }
0x11e5   : > { %s3089_s30 = smov %s3091_s10  ;;  %21 = sbr.rel (!%p19_p5) target bundleno = 7 (0x7), region = 90 }
0x11ec   :  { %1828 = vsyncpa [#allocation6], 1 }
0x11ed   :  { %1830 = vsyncpa [#allocation6 + $0x1], 1 }

</bundles_post_ra>
